<compile_context>
chip_gen: v7x
topology: tpu7x:2x2x1
jax: 0.10.0
libtpu: 0.0.40
codegen_flags: <defaults>
</compile_context>

<pallas_src>
import functools

import jax
import jax.numpy as jnp
from jax.experimental import pallas as pl
from jax.experimental.pallas import tpu as pltpu

_SUBLANE = 8  # f32 sublane tile; batch is padded to a multiple of this.


def _make_fused_kernel(num_layers, T, Bp, H, mm_dtype):
    """Build the fused (all layers + FC head) kernel.

    Ref order: x(T*Bp,D), [w_ih_l(Din,4H), w_hh_l(H,4H), b_l(1,4H)]*L,
               fc_w(H,1), fc_b(1,1)  |  out(Bp,1)  |  hseq scratch (T*Bp,H).
    x / w_ih / w_hh / hseq are mm_dtype; biases, FC head and state are f32.
    Gate order matches PyTorch: i, f, g, o.
    """

    def kernel(*refs):
        x_ref = refs[0]
        layer_refs = refs[1:1 + 3 * num_layers]
        fc_w_ref, fc_b_ref, out_ref, hseq_ref = refs[1 + 3 * num_layers:]

        # Hoisted gate-activation scale: 2.0 on the g (cell-candidate) lanes,
        # 1.0 elsewhere.  tanh(x) = 2*sigmoid(2x) - 1, so one sigmoid pass
        # over (Bp, 4H) covers all four gates.
        lane = jax.lax.broadcasted_iota(jnp.int32, (Bp, 4 * H), 1)
        pre = jnp.where((lane >= 2 * H) & (lane < 3 * H), 2.0, 1.0)
        pre = pre.astype(jnp.float32)
        pre_m1 = pre - 1.0

        h = jnp.zeros((Bp, H), jnp.float32)
        for l in range(num_layers):
            w_ih = layer_refs[3 * l][...]        # (D_in, 4H) mm_dtype
            w_hh = layer_refs[3 * l + 1][...]    # (H, 4H)    mm_dtype
            b = layer_refs[3 * l + 2][...]       # (1, 4H)    f32

            # Layer input: raw x for layer 0, previous layer's hidden seq after.
            seq_in = x_ref[...] if l == 0 else hseq_ref[...]   # (T*Bp, D_in)

            # Hoisted input projection: one big matmul + one bias broadcast.
            # bf16 operands, f32 accumulate.
            gx = jnp.dot(seq_in, w_ih,
                         preferred_element_type=jnp.float32) + b  # (T*Bp, 4H)

            h = jnp.zeros((Bp, H), jnp.float32)
            c = jnp.zeros((Bp, H), jnp.float32)
            last_layer = (l == num_layers - 1)

            # Static unroll of the recurrence (T small & compile-time known).
            for t in range(T):
                # Bp is a multiple of 8 -> sublane-aligned whole-vreg slice.
                gates = gx[t * Bp:(t + 1) * Bp, :] + jnp.dot(
                    h.astype(mm_dtype), w_hh,
                    preferred_element_type=jnp.float32)            # (Bp, 4H)
                # Single EUP pass: sigmoid over all 4H lanes, rescaled so the
                # g block becomes tanh.
                s = jax.nn.sigmoid(gates * pre)
                act = pre * s - pre_m1
                i_g = act[:, 0:H]
                f_g = act[:, H:2 * H]
                g_g = act[:, 2 * H:3 * H]
                o_g = act[:, 3 * H:4 * H]
                c = f_g * c + i_g * g_g
                h = o_g * jnp.tanh(c)
                if not last_layer:
                    # Feed the next layer via VMEM scratch (never hits HBM);
                    # aligned slice store, stored in mm_dtype (bf16 halves
                    # inter-layer activation VMEM).
                    hseq_ref[pl.ds(t * Bp, Bp), :] = h.astype(hseq_ref.dtype)

        # Inlined FC head on the final hidden state (== out[:, -1, :]); f32.
        out_ref[...] = (jnp.dot(h, fc_w_ref[...],
                                preferred_element_type=jnp.float32)
                        + fc_b_ref[...])

    return kernel


@functools.partial(jax.jit, static_argnames=("mm_dtype",))
def lstm_onset_forward(x, params, mm_dtype=jnp.bfloat16):
    """x: (B, T, input_size) batch-first, like the PyTorch module.

    mm_dtype: dtype of the MXU operands / inter-layer activations
              (bf16 default for v6e/v7x; pass jnp.float32 for strict f32).
    State (c, h) math and all accumulations are always f32.
    """
    B, T, D = x.shape
    H = params["fc_w"].shape[0]
    num_layers = len(params["layers"])

    # Pad batch to the 8-row f32 sublane tile so every per-timestep slice and
    # hseq store in the kernel is whole-vreg aligned.
    Bp = ((B + _SUBLANE - 1) // _SUBLANE) * _SUBLANE

    # Time-major, pad batch, then flatten (T, Bp) -> T*Bp rows so every matmul
    # is 2-D and the kernel needs no reshapes.
    x_t = jnp.transpose(x, (1, 0, 2)).astype(jnp.float32)        # (T, B, D)
    x_t = jnp.pad(x_t, ((0, 0), (0, Bp - B), (0, 0)))            # (T, Bp, D)
    x_flat = x_t.reshape(T * Bp, D).astype(mm_dtype)

    flat_w = []
    for (w_ih, w_hh, b) in params["layers"]:
        flat_w += [w_ih.astype(mm_dtype), w_hh.astype(mm_dtype),
                   b.astype(jnp.float32)]

    kernel = _make_fused_kernel(num_layers, T, Bp, H, mm_dtype)
    out = pl.pallas_call(
        kernel,
        out_shape=jax.ShapeDtypeStruct((Bp, 1), jnp.float32),
        scratch_shapes=[pltpu.VMEM((T * Bp, H), mm_dtype)],
    )(x_flat, *flat_w, params["fc_w"].astype(jnp.float32),
      params["fc_b"].astype(jnp.float32))
    return out[:B]


def init_params(key, input_size, hidden_size, num_layers):
    """Deterministic init mimicking PyTorch's U(-1/sqrt(H), 1/sqrt(H)).

    NOTE: weights are stored already transposed to (D_in, 4H) / (H, 4H); real
    PyTorch weights (4H, D_in)/(4H, H) must be transposed before loading.
    """
    params = {"layers": []}
    k_lstm = 1.0 / jnp.sqrt(hidden_size)
    for layer in range(num_layers):
        d_in = input_size if layer == 0 else hidden_size
        key, k1, k2, k3, k4 = jax.random.split(key, 5)
        w_ih = jax.random.uniform(k1, (d_in, 4 * hidden_size),
                                  jnp.float32, -k_lstm, k_lstm)
        w_hh = jax.random.uniform(k2, (hidden_size, 4 * hidden_size),
                                  jnp.float32, -k_lstm, k_lstm)
        b_ih = jax.random.uniform(k3, (1, 4 * hidden_size),
                                  jnp.float32, -k_lstm, k_lstm)
        b_hh = jax.random.uniform(k4, (1, 4 * hidden_size),
                                  jnp.float32, -k_lstm, k_lstm)
        params["layers"].append((w_ih, w_hh, b_ih + b_hh))
    k_fc = 1.0 / jnp.sqrt(hidden_size)
    key, k1, k2 = jax.random.split(key, 3)
    params["fc_w"] = jax.random.uniform(k1, (hidden_size, 1),
                                        jnp.float32, -k_fc, k_fc)
    params["fc_b"] = jax.random.uniform(k2, (1, 1), jnp.float32, -k_fc, k_fc)
    return params


def lstm_onset_reference(x, params):
    """Pure-JAX eval-mode reference (same math, for correctness check)."""
    B, T, _ = x.shape
    seq = x.astype(jnp.float32)                      # (B, T, D)
    for (w_ih, w_hh, b) in params["layers"]:
        H = w_hh.shape[0]

        def step(carry, x_t, w_ih=w_ih, w_hh=w_hh, b=b, H=H):
            h, c = carry
            gates = x_t @ w_ih + h @ w_hh + b
            i = jax.nn.sigmoid(gates[:, 0:H])
            f = jax.nn.sigmoid(gates[:, H:2 * H])
            g = jnp.tanh(gates[:, 2 * H:3 * H])
            o = jax.nn.sigmoid(gates[:, 3 * H:4 * H])
            c = f * c + i * g
            h = o * jnp.tanh(c)
            return (h, c), h

        h0 = jnp.zeros((B, H), jnp.float32)
        c0 = jnp.zeros((B, H), jnp.float32)
        _, hs = jax.lax.scan(step, (h0, c0), jnp.transpose(seq, (1, 0, 2)))
        seq = jnp.transpose(hs, (1, 0, 2))           # (B, T, H)
    return seq[:, -1, :] @ params["fc_w"] + params["fc_b"]


if __name__ == "__main__":
    batch, seq_len, input_size, hidden_size, num_layers = 2, 8, 16, 32, 2

    key = jax.random.PRNGKey(0)
    key, kx = jax.random.split(key)
    x = jax.random.normal(kx, (batch, seq_len, input_size), jnp.float32)

    params = init_params(key, input_size, hidden_size, num_layers)

    ref = jax.block_until_ready(lstm_onset_reference(x, params))

    # Strict-f32 variant: must match the pure-JAX reference tightly.
    out_f32 = jax.block_until_ready(
        lstm_onset_forward(x, params, mm_dtype=jnp.float32))
    assert out_f32.shape == (batch, 1), out_f32.shape
    assert jnp.allclose(out_f32, ref, atol=1e-3, rtol=1e-3), (out_f32, ref)

    # Default bf16-MXU variant (v6e/v7x path): f32 accumulate / f32 state,
    # bf16 operands & inter-layer activations -> looser tolerance.
    out_bf16 = jax.block_until_ready(lstm_onset_forward(x, params))
    assert out_bf16.shape == (batch, 1), out_bf16.shape
    assert jnp.allclose(out_bf16, ref, atol=2e-2, rtol=2e-2), (out_bf16, ref)

    print("KERNEL_OK")
</pallas_src>

<mosaic_0001>
module attributes {stable_mosaic.version = 11 : i64} {
  func.func @kernel(%arg0: memref<64x16xf32, #tpu.memory_space<vmem>>, %arg1: memref<16x128xf32, #tpu.memory_space<vmem>>, %arg2: memref<32x128xf32, #tpu.memory_space<vmem>>, %arg3: memref<1x128xf32, #tpu.memory_space<vmem>>, %arg4: memref<32x128xf32, #tpu.memory_space<vmem>>, %arg5: memref<32x128xf32, #tpu.memory_space<vmem>>, %arg6: memref<1x128xf32, #tpu.memory_space<vmem>>, %arg7: memref<32x1xf32, #tpu.memory_space<vmem>>, %arg8: memref<1x1xf32, #tpu.memory_space<vmem>>, %arg9: memref<8x1xf32, #tpu.memory_space<vmem>>, %arg10: memref<64x32xf32, #tpu.memory_space<vmem>>) attributes {dimension_semantics = [], scalar_prefetch = 0 : i64, scratch_operands = 1 : i64, tpu.core_type = #tpu.core_type<tc>} {
    %0 = tpu.iota {dimensions = array<i32: 1>} : vector<8x128xi32>
    %c64_i32 = arith.constant 64 : i32
    %1 = vector.broadcast %c64_i32 : i32 to vector<8x128xi32>
    %2 = arith.cmpi sge, %0, %1 : vector<8x128xi32>
    %c96_i32 = arith.constant 96 : i32
    %3 = vector.broadcast %c96_i32 : i32 to vector<8x128xi32>
    %4 = arith.cmpi slt, %0, %3 : vector<8x128xi32>
    %5 = arith.andi %2, %4 : vector<8x128xi1>
    %cst = arith.constant 2.000000e+00 : f32
    %cst_0 = arith.constant 1.000000e+00 : f32
    %6 = vector.broadcast %cst : f32 to vector<8x128xf32>
    %7 = vector.broadcast %cst_0 : f32 to vector<8x128xf32>
    %8 = arith.select %5, %6, %7 : vector<8x128xi1>, vector<8x128xf32>
    %cst_1 = arith.constant 1.000000e+00 : f32
    %9 = vector.broadcast %cst_1 : f32 to vector<8x128xf32>
    %10 = arith.subf %8, %9 : vector<8x128xf32>
    %c0 = arith.constant 0 : index
    %c0_2 = arith.constant 0 : index
    %11 = vector.load %arg1[%c0, %c0_2] : memref<16x128xf32, #tpu.memory_space<vmem>>, vector<16x128xf32>
    %c0_3 = arith.constant 0 : index
    %c0_4 = arith.constant 0 : index
    %12 = vector.load %arg2[%c0_3, %c0_4] : memref<32x128xf32, #tpu.memory_space<vmem>>, vector<32x128xf32>
    %c0_5 = arith.constant 0 : index
    %c0_6 = arith.constant 0 : index
    %13 = vector.load %arg3[%c0_5, %c0_6] : memref<1x128xf32, #tpu.memory_space<vmem>>, vector<1x128xf32>
    %c0_7 = arith.constant 0 : index
    %c0_8 = arith.constant 0 : index
    %14 = vector.load %arg0[%c0_7, %c0_8] : memref<64x16xf32, #tpu.memory_space<vmem>>, vector<64x16xf32>
    %cst_9 = arith.constant dense<0.000000e+00> : vector<64x128xf32>
    %15 = tpu.matmul %14, %11, %cst_9 {dimension_numbers = #tpu.dot_dimension_numbers<[1], [0], [0], [1], [0, 0, 1, 1], [], []>} : vector<64x16xf32>, vector<16x128xf32>, vector<64x128xf32> -> vector<64x128xf32>
    %16 = vector.broadcast %13 : vector<1x128xf32> to vector<64x128xf32>
    %17 = arith.addf %15, %16 : vector<64x128xf32>
    %cst_10 = arith.constant 0.000000e+00 : f32
    %18 = vector.broadcast %cst_10 : f32 to vector<8x32xf32>
    %cst_11 = arith.constant 0.000000e+00 : f32
    %19 = vector.broadcast %cst_11 : f32 to vector<8x32xf32>
    %20 = vector.extract_strided_slice %17 {offsets = [0, 0], sizes = [8, 128], strides = [1, 1]} : vector<64x128xf32> to vector<8x128xf32>
    %cst_12 = arith.constant dense<0.000000e+00> : vector<8x128xf32>
    %21 = tpu.matmul %18, %12, %cst_12 {dimension_numbers = #tpu.dot_dimension_numbers<[1], [0], [0], [1], [0, 0, 1, 1], [], []>} : vector<8x32xf32>, vector<32x128xf32>, vector<8x128xf32> -> vector<8x128xf32>
    %22 = arith.addf %20, %21 : vector<8x128xf32>
    %23 = arith.mulf %22, %8 : vector<8x128xf32>
    %24 = arith.negf %23 : vector<8x128xf32>
    %25 = math.exp %24 : vector<8x128xf32>
    %cst_13 = arith.constant 1.000000e+00 : f32
    %26 = vector.broadcast %cst_13 : f32 to vector<8x128xf32>
    %27 = arith.addf %26, %25 : vector<8x128xf32>
    %28 = arith.divf %26, %27 : vector<8x128xf32>
    %29 = arith.mulf %8, %28 : vector<8x128xf32>
    %30 = arith.subf %29, %10 : vector<8x128xf32>
    %31 = vector.extract_strided_slice %30 {offsets = [0, 0], sizes = [8, 32], strides = [1, 1]} : vector<8x128xf32> to vector<8x32xf32>
    %32 = vector.extract_strided_slice %30 {offsets = [0, 32], sizes = [8, 32], strides = [1, 1]} : vector<8x128xf32> to vector<8x32xf32>
    %33 = vector.extract_strided_slice %30 {offsets = [0, 64], sizes = [8, 32], strides = [1, 1]} : vector<8x128xf32> to vector<8x32xf32>
    %34 = vector.extract_strided_slice %30 {offsets = [0, 96], sizes = [8, 32], strides = [1, 1]} : vector<8x128xf32> to vector<8x32xf32>
    %35 = arith.mulf %32, %19 : vector<8x32xf32>
    %36 = arith.mulf %31, %33 : vector<8x32xf32>
    %37 = arith.addf %35, %36 : vector<8x32xf32>
    %38 = math.tanh %37 : vector<8x32xf32>
    %39 = arith.mulf %34, %38 : vector<8x32xf32>
    %c0_14 = arith.constant 0 : index
    %c0_15 = arith.constant 0 : index
    %40 = vector.load %arg10[%c0_14, %c0_15] : memref<64x32xf32, #tpu.memory_space<vmem>>, vector<8x32xf32>
    tpu.vector_store %arg10[%c0_14, %c0_15], %39 {strides = array<i32>} : memref<64x32xf32, #tpu.memory_space<vmem>>, vector<8x32xf32>,
    %41 = vector.extract_strided_slice %17 {offsets = [8, 0], sizes = [8, 128], strides = [1, 1]} : vector<64x128xf32> to vector<8x128xf32>
    %cst_16 = arith.constant dense<0.000000e+00> : vector<8x128xf32>
    %42 = tpu.matmul %39, %12, %cst_16 {dimension_numbers = #tpu.dot_dimension_numbers<[1], [0], [0], [1], [0, 0, 1, 1], [], []>} : vector<8x32xf32>, vector<32x128xf32>, vector<8x128xf32> -> vector<8x128xf32>
    %43 = arith.addf %41, %42 : vector<8x128xf32>
    %44 = arith.mulf %43, %8 : vector<8x128xf32>
    %45 = arith.negf %44 : vector<8x128xf32>
    %46 = math.exp %45 : vector<8x128xf32>
    %cst_17 = arith.constant 1.000000e+00 : f32
    %47 = vector.broadcast %cst_17 : f32 to vector<8x128xf32>
    %48 = arith.addf %47, %46 : vector<8x128xf32>
    %49 = arith.divf %47, %48 : vector<8x128xf32>
    %50 = arith.mulf %8, %49 : vector<8x128xf32>
    %51 = arith.subf %50, %10 : vector<8x128xf32>
    %52 = vector.extract_strided_slice %51 {offsets = [0, 0], sizes = [8, 32], strides = [1, 1]} : vector<8x128xf32> to vector<8x32xf32>
    %53 = vector.extract_strided_slice %51 {offsets = [0, 32], sizes = [8, 32], strides = [1, 1]} : vector<8x128xf32> to vector<8x32xf32>
    %54 = vector.extract_strided_slice %51 {offsets = [0, 64], sizes = [8, 32], strides = [1, 1]} : vector<8x128xf32> to vector<8x32xf32>
    %55 = vector.extract_strided_slice %51 {offsets = [0, 96], sizes = [8, 32], strides = [1, 1]} : vector<8x128xf32> to vector<8x32xf32>
    %56 = arith.mulf %53, %37 : vector<8x32xf32>
    %57 = arith.mulf %52, %54 : vector<8x32xf32>
    %58 = arith.addf %56, %57 : vector<8x32xf32>
    %59 = math.tanh %58 : vector<8x32xf32>
    %60 = arith.mulf %55, %59 : vector<8x32xf32>
    %c8 = arith.constant 8 : index
    %c0_18 = arith.constant 0 : index
    %61 = vector.load %arg10[%c8, %c0_18] : memref<64x32xf32, #tpu.memory_space<vmem>>, vector<8x32xf32>
    tpu.vector_store %arg10[%c8, %c0_18], %60 {strides = array<i32>} : memref<64x32xf32, #tpu.memory_space<vmem>>, vector<8x32xf32>,
    %62 = vector.extract_strided_slice %17 {offsets = [16, 0], sizes = [8, 128], strides = [1, 1]} : vector<64x128xf32> to vector<8x128xf32>
    %cst_19 = arith.constant dense<0.000000e+00> : vector<8x128xf32>
    %63 = tpu.matmul %60, %12, %cst_19 {dimension_numbers = #tpu.dot_dimension_numbers<[1], [0], [0], [1], [0, 0, 1, 1], [], []>} : vector<8x32xf32>, vector<32x128xf32>, vector<8x128xf32> -> vector<8x128xf32>
    %64 = arith.addf %62, %63 : vector<8x128xf32>
    %65 = arith.mulf %64, %8 : vector<8x128xf32>
    %66 = arith.negf %65 : vector<8x128xf32>
    %67 = math.exp %66 : vector<8x128xf32>
    %cst_20 = arith.constant 1.000000e+00 : f32
    %68 = vector.broadcast %cst_20 : f32 to vector<8x128xf32>
    %69 = arith.addf %68, %67 : vector<8x128xf32>
    %70 = arith.divf %68, %69 : vector<8x128xf32>
    %71 = arith.mulf %8, %70 : vector<8x128xf32>
    %72 = arith.subf %71, %10 : vector<8x128xf32>
    %73 = vector.extract_strided_slice %72 {offsets = [0, 0], sizes = [8, 32], strides = [1, 1]} : vector<8x128xf32> to vector<8x32xf32>
    %74 = vector.extract_strided_slice %72 {offsets = [0, 32], sizes = [8, 32], strides = [1, 1]} : vector<8x128xf32> to vector<8x32xf32>
    %75 = vector.extract_strided_slice %72 {offsets = [0, 64], sizes = [8, 32], strides = [1, 1]} : vector<8x128xf32> to vector<8x32xf32>
    %76 = vector.extract_strided_slice %72 {offsets = [0, 96], sizes = [8, 32], strides = [1, 1]} : vector<8x128xf32> to vector<8x32xf32>
    %77 = arith.mulf %74, %58 : vector<8x32xf32>
    %78 = arith.mulf %73, %75 : vector<8x32xf32>
    %79 = arith.addf %77, %78 : vector<8x32xf32>
    %80 = math.tanh %79 : vector<8x32xf32>
    %81 = arith.mulf %76, %80 : vector<8x32xf32>
    %c16 = arith.constant 16 : index
    %c0_21 = arith.constant 0 : index
    %82 = vector.load %arg10[%c16, %c0_21] : memref<64x32xf32, #tpu.memory_space<vmem>>, vector<8x32xf32>
    tpu.vector_store %arg10[%c16, %c0_21], %81 {strides = array<i32>} : memref<64x32xf32, #tpu.memory_space<vmem>>, vector<8x32xf32>,
    %83 = vector.extract_strided_slice %17 {offsets = [24, 0], sizes = [8, 128], strides = [1, 1]} : vector<64x128xf32> to vector<8x128xf32>
    %cst_22 = arith.constant dense<0.000000e+00> : vector<8x128xf32>
    %84 = tpu.matmul %81, %12, %cst_22 {dimension_numbers = #tpu.dot_dimension_numbers<[1], [0], [0], [1], [0, 0, 1, 1], [], []>} : vector<8x32xf32>, vector<32x128xf32>, vector<8x128xf32> -> vector<8x128xf32>
    %85 = arith.addf %83, %84 : vector<8x128xf32>
    %86 = arith.mulf %85, %8 : vector<8x128xf32>
    %87 = arith.negf %86 : vector<8x128xf32>
    %88 = math.exp %87 : vector<8x128xf32>
    %cst_23 = arith.constant 1.000000e+00 : f32
    %89 = vector.broadcast %cst_23 : f32 to vector<8x128xf32>
    %90 = arith.addf %89, %88 : vector<8x128xf32>
    %91 = arith.divf %89, %90 : vector<8x128xf32>
    %92 = arith.mulf %8, %91 : vector<8x128xf32>
    %93 = arith.subf %92, %10 : vector<8x128xf32>
    %94 = vector.extract_strided_slice %93 {offsets = [0, 0], sizes = [8, 32], strides = [1, 1]} : vector<8x128xf32> to vector<8x32xf32>
    %95 = vector.extract_strided_slice %93 {offsets = [0, 32], sizes = [8, 32], strides = [1, 1]} : vector<8x128xf32> to vector<8x32xf32>
    %96 = vector.extract_strided_slice %93 {offsets = [0, 64], sizes = [8, 32], strides = [1, 1]} : vector<8x128xf32> to vector<8x32xf32>
    %97 = vector.extract_strided_slice %93 {offsets = [0, 96], sizes = [8, 32], strides = [1, 1]} : vector<8x128xf32> to vector<8x32xf32>
    %98 = arith.mulf %95, %79 : vector<8x32xf32>
    %99 = arith.mulf %94, %96 : vector<8x32xf32>
    %100 = arith.addf %98, %99 : vector<8x32xf32>
    %101 = math.tanh %100 : vector<8x32xf32>
    %102 = arith.mulf %97, %101 : vector<8x32xf32>
    %c24 = arith.constant 24 : index
    %c0_24 = arith.constant 0 : index
    %103 = vector.load %arg10[%c24, %c0_24] : memref<64x32xf32, #tpu.memory_space<vmem>>, vector<8x32xf32>
    tpu.vector_store %arg10[%c24, %c0_24], %102 {strides = array<i32>} : memref<64x32xf32, #tpu.memory_space<vmem>>, vector<8x32xf32>,
    %104 = vector.extract_strided_slice %17 {offsets = [32, 0], sizes = [8, 128], strides = [1, 1]} : vector<64x128xf32> to vector<8x128xf32>
    %cst_25 = arith.constant dense<0.000000e+00> : vector<8x128xf32>
    %105 = tpu.matmul %102, %12, %cst_25 {dimension_numbers = #tpu.dot_dimension_numbers<[1], [0], [0], [1], [0, 0, 1, 1], [], []>} : vector<8x32xf32>, vector<32x128xf32>, vector<8x128xf32> -> vector<8x128xf32>
    %106 = arith.addf %104, %105 : vector<8x128xf32>
    %107 = arith.mulf %106, %8 : vector<8x128xf32>
    %108 = arith.negf %107 : vector<8x128xf32>
    %109 = math.exp %108 : vector<8x128xf32>
    %cst_26 = arith.constant 1.000000e+00 : f32
    %110 = vector.broadcast %cst_26 : f32 to vector<8x128xf32>
    %111 = arith.addf %110, %109 : vector<8x128xf32>
    %112 = arith.divf %110, %111 : vector<8x128xf32>
    %113 = arith.mulf %8, %112 : vector<8x128xf32>
    %114 = arith.subf %113, %10 : vector<8x128xf32>
    %115 = vector.extract_strided_slice %114 {offsets = [0, 0], sizes = [8, 32], strides = [1, 1]} : vector<8x128xf32> to vector<8x32xf32>
    %116 = vector.extract_strided_slice %114 {offsets = [0, 32], sizes = [8, 32], strides = [1, 1]} : vector<8x128xf32> to vector<8x32xf32>
    %117 = vector.extract_strided_slice %114 {offsets = [0, 64], sizes = [8, 32], strides = [1, 1]} : vector<8x128xf32> to vector<8x32xf32>
    %118 = vector.extract_strided_slice %114 {offsets = [0, 96], sizes = [8, 32], strides = [1, 1]} : vector<8x128xf32> to vector<8x32xf32>
    %119 = arith.mulf %116, %100 : vector<8x32xf32>
    %120 = arith.mulf %115, %117 : vector<8x32xf32>
    %121 = arith.addf %119, %120 : vector<8x32xf32>
    %122 = math.tanh %121 : vector<8x32xf32>
    %123 = arith.mulf %118, %122 : vector<8x32xf32>
    %c32 = arith.constant 32 : index
    %c0_27 = arith.constant 0 : index
    %124 = vector.load %arg10[%c32, %c0_27] : memref<64x32xf32, #tpu.memory_space<vmem>>, vector<8x32xf32>
    tpu.vector_store %arg10[%c32, %c0_27], %123 {strides = array<i32>} : memref<64x32xf32, #tpu.memory_space<vmem>>, vector<8x32xf32>,
    %125 = vector.extract_strided_slice %17 {offsets = [40, 0], sizes = [8, 128], strides = [1, 1]} : vector<64x128xf32> to vector<8x128xf32>
    %cst_28 = arith.constant dense<0.000000e+00> : vector<8x128xf32>
    %126 = tpu.matmul %123, %12, %cst_28 {dimension_numbers = #tpu.dot_dimension_numbers<[1], [0], [0], [1], [0, 0, 1, 1], [], []>} : vector<8x32xf32>, vector<32x128xf32>, vector<8x128xf32> -> vector<8x128xf32>
    %127 = arith.addf %125, %126 : vector<8x128xf32>
    %128 = arith.mulf %127, %8 : vector<8x128xf32>
    %129 = arith.negf %128 : vector<8x128xf32>
    %130 = math.exp %129 : vector<8x128xf32>
    %cst_29 = arith.constant 1.000000e+00 : f32
    %131 = vector.broadcast %cst_29 : f32 to vector<8x128xf32>
    %132 = arith.addf %131, %130 : vector<8x128xf32>
    %133 = arith.divf %131, %132 : vector<8x128xf32>
    %134 = arith.mulf %8, %133 : vector<8x128xf32>
    %135 = arith.subf %134, %10 : vector<8x128xf32>
    %136 = vector.extract_strided_slice %135 {offsets = [0, 0], sizes = [8, 32], strides = [1, 1]} : vector<8x128xf32> to vector<8x32xf32>
    %137 = vector.extract_strided_slice %135 {offsets = [0, 32], sizes = [8, 32], strides = [1, 1]} : vector<8x128xf32> to vector<8x32xf32>
    %138 = vector.extract_strided_slice %135 {offsets = [0, 64], sizes = [8, 32], strides = [1, 1]} : vector<8x128xf32> to vector<8x32xf32>
    %139 = vector.extract_strided_slice %135 {offsets = [0, 96], sizes = [8, 32], strides = [1, 1]} : vector<8x128xf32> to vector<8x32xf32>
    %140 = arith.mulf %137, %121 : vector<8x32xf32>
    %141 = arith.mulf %136, %138 : vector<8x32xf32>
    %142 = arith.addf %140, %141 : vector<8x32xf32>
    %143 = math.tanh %142 : vector<8x32xf32>
    %144 = arith.mulf %139, %143 : vector<8x32xf32>
    %c40 = arith.constant 40 : index
    %c0_30 = arith.constant 0 : index
    %145 = vector.load %arg10[%c40, %c0_30] : memref<64x32xf32, #tpu.memory_space<vmem>>, vector<8x32xf32>
    tpu.vector_store %arg10[%c40, %c0_30], %144 {strides = array<i32>} : memref<64x32xf32, #tpu.memory_space<vmem>>, vector<8x32xf32>,
    %146 = vector.extract_strided_slice %17 {offsets = [48, 0], sizes = [8, 128], strides = [1, 1]} : vector<64x128xf32> to vector<8x128xf32>
    %cst_31 = arith.constant dense<0.000000e+00> : vector<8x128xf32>
    %147 = tpu.matmul %144, %12, %cst_31 {dimension_numbers = #tpu.dot_dimension_numbers<[1], [0], [0], [1], [0, 0, 1, 1], [], []>} : vector<8x32xf32>, vector<32x128xf32>, vector<8x128xf32> -> vector<8x128xf32>
    %148 = arith.addf %146, %147 : vector<8x128xf32>
    %149 = arith.mulf %148, %8 : vector<8x128xf32>
    %150 = arith.negf %149 : vector<8x128xf32>
    %151 = math.exp %150 : vector<8x128xf32>
    %cst_32 = arith.constant 1.000000e+00 : f32
    %152 = vector.broadcast %cst_32 : f32 to vector<8x128xf32>
    %153 = arith.addf %152, %151 : vector<8x128xf32>
    %154 = arith.divf %152, %153 : vector<8x128xf32>
    %155 = arith.mulf %8, %154 : vector<8x128xf32>
    %156 = arith.subf %155, %10 : vector<8x128xf32>
    %157 = vector.extract_strided_slice %156 {offsets = [0, 0], sizes = [8, 32], strides = [1, 1]} : vector<8x128xf32> to vector<8x32xf32>
    %158 = vector.extract_strided_slice %156 {offsets = [0, 32], sizes = [8, 32], strides = [1, 1]} : vector<8x128xf32> to vector<8x32xf32>
    %159 = vector.extract_strided_slice %156 {offsets = [0, 64], sizes = [8, 32], strides = [1, 1]} : vector<8x128xf32> to vector<8x32xf32>
    %160 = vector.extract_strided_slice %156 {offsets = [0, 96], sizes = [8, 32], strides = [1, 1]} : vector<8x128xf32> to vector<8x32xf32>
    %161 = arith.mulf %158, %142 : vector<8x32xf32>
    %162 = arith.mulf %157, %159 : vector<8x32xf32>
    %163 = arith.addf %161, %162 : vector<8x32xf32>
    %164 = math.tanh %163 : vector<8x32xf32>
    %165 = arith.mulf %160, %164 : vector<8x32xf32>
    %c48 = arith.constant 48 : index
    %c0_33 = arith.constant 0 : index
    %166 = vector.load %arg10[%c48, %c0_33] : memref<64x32xf32, #tpu.memory_space<vmem>>, vector<8x32xf32>
    tpu.vector_store %arg10[%c48, %c0_33], %165 {strides = array<i32>} : memref<64x32xf32, #tpu.memory_space<vmem>>, vector<8x32xf32>,
    %167 = vector.extract_strided_slice %17 {offsets = [56, 0], sizes = [8, 128], strides = [1, 1]} : vector<64x128xf32> to vector<8x128xf32>
    %cst_34 = arith.constant dense<0.000000e+00> : vector<8x128xf32>
    %168 = tpu.matmul %165, %12, %cst_34 {dimension_numbers = #tpu.dot_dimension_numbers<[1], [0], [0], [1], [0, 0, 1, 1], [], []>} : vector<8x32xf32>, vector<32x128xf32>, vector<8x128xf32> -> vector<8x128xf32>
    %169 = arith.addf %167, %168 : vector<8x128xf32>
    %170 = arith.mulf %169, %8 : vector<8x128xf32>
    %171 = arith.negf %170 : vector<8x128xf32>
    %172 = math.exp %171 : vector<8x128xf32>
    %cst_35 = arith.constant 1.000000e+00 : f32
    %173 = vector.broadcast %cst_35 : f32 to vector<8x128xf32>
    %174 = arith.addf %173, %172 : vector<8x128xf32>
    %175 = arith.divf %173, %174 : vector<8x128xf32>
    %176 = arith.mulf %8, %175 : vector<8x128xf32>
    %177 = arith.subf %176, %10 : vector<8x128xf32>
    %178 = vector.extract_strided_slice %177 {offsets = [0, 0], sizes = [8, 32], strides = [1, 1]} : vector<8x128xf32> to vector<8x32xf32>
    %179 = vector.extract_strided_slice %177 {offsets = [0, 32], sizes = [8, 32], strides = [1, 1]} : vector<8x128xf32> to vector<8x32xf32>
    %180 = vector.extract_strided_slice %177 {offsets = [0, 64], sizes = [8, 32], strides = [1, 1]} : vector<8x128xf32> to vector<8x32xf32>
    %181 = vector.extract_strided_slice %177 {offsets = [0, 96], sizes = [8, 32], strides = [1, 1]} : vector<8x128xf32> to vector<8x32xf32>
    %182 = arith.mulf %179, %163 : vector<8x32xf32>
    %183 = arith.mulf %178, %180 : vector<8x32xf32>
    %184 = arith.addf %182, %183 : vector<8x32xf32>
    %185 = math.tanh %184 : vector<8x32xf32>
    %186 = arith.mulf %181, %185 : vector<8x32xf32>
    %c56 = arith.constant 56 : index
    %c0_36 = arith.constant 0 : index
    %187 = vector.load %arg10[%c56, %c0_36] : memref<64x32xf32, #tpu.memory_space<vmem>>, vector<8x32xf32>
    tpu.vector_store %arg10[%c56, %c0_36], %186 {strides = array<i32>} : memref<64x32xf32, #tpu.memory_space<vmem>>, vector<8x32xf32>,
    %c0_37 = arith.constant 0 : index
    %c0_38 = arith.constant 0 : index
    %188 = vector.load %arg4[%c0_37, %c0_38] : memref<32x128xf32, #tpu.memory_space<vmem>>, vector<32x128xf32>
    %c0_39 = arith.constant 0 : index
    %c0_40 = arith.constant 0 : index
    %189 = vector.load %arg5[%c0_39, %c0_40] : memref<32x128xf32, #tpu.memory_space<vmem>>, vector<32x128xf32>
    %c0_41 = arith.constant 0 : index
    %c0_42 = arith.constant 0 : index
    %190 = vector.load %arg6[%c0_41, %c0_42] : memref<1x128xf32, #tpu.memory_space<vmem>>, vector<1x128xf32>
    %c0_43 = arith.constant 0 : index
    %c0_44 = arith.constant 0 : index
    %191 = vector.load %arg10[%c0_43, %c0_44] : memref<64x32xf32, #tpu.memory_space<vmem>>, vector<64x32xf32>
    %cst_45 = arith.constant dense<0.000000e+00> : vector<64x128xf32>
    %192 = tpu.matmul %191, %188, %cst_45 {dimension_numbers = #tpu.dot_dimension_numbers<[1], [0], [0], [1], [0, 0, 1, 1], [], []>} : vector<64x32xf32>, vector<32x128xf32>, vector<64x128xf32> -> vector<64x128xf32>
    %193 = vector.broadcast %190 : vector<1x128xf32> to vector<64x128xf32>
    %194 = arith.addf %192, %193 : vector<64x128xf32>
    %cst_46 = arith.constant 0.000000e+00 : f32
    %195 = vector.broadcast %cst_46 : f32 to vector<8x32xf32>
    %cst_47 = arith.constant 0.000000e+00 : f32
    %196 = vector.broadcast %cst_47 : f32 to vector<8x32xf32>
    %197 = vector.extract_strided_slice %194 {offsets = [0, 0], sizes = [8, 128], strides = [1, 1]} : vector<64x128xf32> to vector<8x128xf32>
    %cst_48 = arith.constant dense<0.000000e+00> : vector<8x128xf32>
    %198 = tpu.matmul %195, %189, %cst_48 {dimension_numbers = #tpu.dot_dimension_numbers<[1], [0], [0], [1], [0, 0, 1, 1], [], []>} : vector<8x32xf32>, vector<32x128xf32>, vector<8x128xf32> -> vector<8x128xf32>
    %199 = arith.addf %197, %198 : vector<8x128xf32>
    %200 = arith.mulf %199, %8 : vector<8x128xf32>
    %201 = arith.negf %200 : vector<8x128xf32>
    %202 = math.exp %201 : vector<8x128xf32>
    %cst_49 = arith.constant 1.000000e+00 : f32
    %203 = vector.broadcast %cst_49 : f32 to vector<8x128xf32>
    %204 = arith.addf %203, %202 : vector<8x128xf32>
    %205 = arith.divf %203, %204 : vector<8x128xf32>
    %206 = arith.mulf %8, %205 : vector<8x128xf32>
    %207 = arith.subf %206, %10 : vector<8x128xf32>
    %208 = vector.extract_strided_slice %207 {offsets = [0, 0], sizes = [8, 32], strides = [1, 1]} : vector<8x128xf32> to vector<8x32xf32>
    %209 = vector.extract_strided_slice %207 {offsets = [0, 32], sizes = [8, 32], strides = [1, 1]} : vector<8x128xf32> to vector<8x32xf32>
    %210 = vector.extract_strided_slice %207 {offsets = [0, 64], sizes = [8, 32], strides = [1, 1]} : vector<8x128xf32> to vector<8x32xf32>
    %211 = vector.extract_strided_slice %207 {offsets = [0, 96], sizes = [8, 32], strides = [1, 1]} : vector<8x128xf32> to vector<8x32xf32>
    %212 = arith.mulf %209, %196 : vector<8x32xf32>
    %213 = arith.mulf %208, %210 : vector<8x32xf32>
    %214 = arith.addf %212, %213 : vector<8x32xf32>
    %215 = math.tanh %214 : vector<8x32xf32>
    %216 = arith.mulf %211, %215 : vector<8x32xf32>
    %217 = vector.extract_strided_slice %194 {offsets = [8, 0], sizes = [8, 128], strides = [1, 1]} : vector<64x128xf32> to vector<8x128xf32>
    %cst_50 = arith.constant dense<0.000000e+00> : vector<8x128xf32>
    %218 = tpu.matmul %216, %189, %cst_50 {dimension_numbers = #tpu.dot_dimension_numbers<[1], [0], [0], [1], [0, 0, 1, 1], [], []>} : vector<8x32xf32>, vector<32x128xf32>, vector<8x128xf32> -> vector<8x128xf32>
    %219 = arith.addf %217, %218 : vector<8x128xf32>
    %220 = arith.mulf %219, %8 : vector<8x128xf32>
    %221 = arith.negf %220 : vector<8x128xf32>
    %222 = math.exp %221 : vector<8x128xf32>
    %cst_51 = arith.constant 1.000000e+00 : f32
    %223 = vector.broadcast %cst_51 : f32 to vector<8x128xf32>
    %224 = arith.addf %223, %222 : vector<8x128xf32>
    %225 = arith.divf %223, %224 : vector<8x128xf32>
    %226 = arith.mulf %8, %225 : vector<8x128xf32>
    %227 = arith.subf %226, %10 : vector<8x128xf32>
    %228 = vector.extract_strided_slice %227 {offsets = [0, 0], sizes = [8, 32], strides = [1, 1]} : vector<8x128xf32> to vector<8x32xf32>
    %229 = vector.extract_strided_slice %227 {offsets = [0, 32], sizes = [8, 32], strides = [1, 1]} : vector<8x128xf32> to vector<8x32xf32>
    %230 = vector.extract_strided_slice %227 {offsets = [0, 64], sizes = [8, 32], strides = [1, 1]} : vector<8x128xf32> to vector<8x32xf32>
    %231 = vector.extract_strided_slice %227 {offsets = [0, 96], sizes = [8, 32], strides = [1, 1]} : vector<8x128xf32> to vector<8x32xf32>
    %232 = arith.mulf %229, %214 : vector<8x32xf32>
    %233 = arith.mulf %228, %230 : vector<8x32xf32>
    %234 = arith.addf %232, %233 : vector<8x32xf32>
    %235 = math.tanh %234 : vector<8x32xf32>
    %236 = arith.mulf %231, %235 : vector<8x32xf32>
    %237 = vector.extract_strided_slice %194 {offsets = [16, 0], sizes = [8, 128], strides = [1, 1]} : vector<64x128xf32> to vector<8x128xf32>
    %cst_52 = arith.constant dense<0.000000e+00> : vector<8x128xf32>
    %238 = tpu.matmul %236, %189, %cst_52 {dimension_numbers = #tpu.dot_dimension_numbers<[1], [0], [0], [1], [0, 0, 1, 1], [], []>} : vector<8x32xf32>, vector<32x128xf32>, vector<8x128xf32> -> vector<8x128xf32>
    %239 = arith.addf %237, %238 : vector<8x128xf32>
    %240 = arith.mulf %239, %8 : vector<8x128xf32>
    %241 = arith.negf %240 : vector<8x128xf32>
    %242 = math.exp %241 : vector<8x128xf32>
    %cst_53 = arith.constant 1.000000e+00 : f32
    %243 = vector.broadcast %cst_53 : f32 to vector<8x128xf32>
    %244 = arith.addf %243, %242 : vector<8x128xf32>
    %245 = arith.divf %243, %244 : vector<8x128xf32>
    %246 = arith.mulf %8, %245 : vector<8x128xf32>
    %247 = arith.subf %246, %10 : vector<8x128xf32>
    %248 = vector.extract_strided_slice %247 {offsets = [0, 0], sizes = [8, 32], strides = [1, 1]} : vector<8x128xf32> to vector<8x32xf32>
    %249 = vector.extract_strided_slice %247 {offsets = [0, 32], sizes = [8, 32], strides = [1, 1]} : vector<8x128xf32> to vector<8x32xf32>
    %250 = vector.extract_strided_slice %247 {offsets = [0, 64], sizes = [8, 32], strides = [1, 1]} : vector<8x128xf32> to vector<8x32xf32>
    %251 = vector.extract_strided_slice %247 {offsets = [0, 96], sizes = [8, 32], strides = [1, 1]} : vector<8x128xf32> to vector<8x32xf32>
    %252 = arith.mulf %249, %234 : vector<8x32xf32>
    %253 = arith.mulf %248, %250 : vector<8x32xf32>
    %254 = arith.addf %252, %253 : vector<8x32xf32>
    %255 = math.tanh %254 : vector<8x32xf32>
    %256 = arith.mulf %251, %255 : vector<8x32xf32>
    %257 = vector.extract_strided_slice %194 {offsets = [24, 0], sizes = [8, 128], strides = [1, 1]} : vector<64x128xf32> to vector<8x128xf32>
    %cst_54 = arith.constant dense<0.000000e+00> : vector<8x128xf32>
    %258 = tpu.matmul %256, %189, %cst_54 {dimension_numbers = #tpu.dot_dimension_numbers<[1], [0], [0], [1], [0, 0, 1, 1], [], []>} : vector<8x32xf32>, vector<32x128xf32>, vector<8x128xf32> -> vector<8x128xf32>
    %259 = arith.addf %257, %258 : vector<8x128xf32>
    %260 = arith.mulf %259, %8 : vector<8x128xf32>
    %261 = arith.negf %260 : vector<8x128xf32>
    %262 = math.exp %261 : vector<8x128xf32>
    %cst_55 = arith.constant 1.000000e+00 : f32
    %263 = vector.broadcast %cst_55 : f32 to vector<8x128xf32>
    %264 = arith.addf %263, %262 : vector<8x128xf32>
    %265 = arith.divf %263, %264 : vector<8x128xf32>
    %266 = arith.mulf %8, %265 : vector<8x128xf32>
    %267 = arith.subf %266, %10 : vector<8x128xf32>
    %268 = vector.extract_strided_slice %267 {offsets = [0, 0], sizes = [8, 32], strides = [1, 1]} : vector<8x128xf32> to vector<8x32xf32>
    %269 = vector.extract_strided_slice %267 {offsets = [0, 32], sizes = [8, 32], strides = [1, 1]} : vector<8x128xf32> to vector<8x32xf32>
    %270 = vector.extract_strided_slice %267 {offsets = [0, 64], sizes = [8, 32], strides = [1, 1]} : vector<8x128xf32> to vector<8x32xf32>
    %271 = vector.extract_strided_slice %267 {offsets = [0, 96], sizes = [8, 32], strides = [1, 1]} : vector<8x128xf32> to vector<8x32xf32>
    %272 = arith.mulf %269, %254 : vector<8x32xf32>
    %273 = arith.mulf %268, %270 : vector<8x32xf32>
    %274 = arith.addf %272, %273 : vector<8x32xf32>
    %275 = math.tanh %274 : vector<8x32xf32>
    %276 = arith.mulf %271, %275 : vector<8x32xf32>
    %277 = vector.extract_strided_slice %194 {offsets = [32, 0], sizes = [8, 128], strides = [1, 1]} : vector<64x128xf32> to vector<8x128xf32>
    %cst_56 = arith.constant dense<0.000000e+00> : vector<8x128xf32>
    %278 = tpu.matmul %276, %189, %cst_56 {dimension_numbers = #tpu.dot_dimension_numbers<[1], [0], [0], [1], [0, 0, 1, 1], [], []>} : vector<8x32xf32>, vector<32x128xf32>, vector<8x128xf32> -> vector<8x128xf32>
    %279 = arith.addf %277, %278 : vector<8x128xf32>
    %280 = arith.mulf %279, %8 : vector<8x128xf32>
    %281 = arith.negf %280 : vector<8x128xf32>
    %282 = math.exp %281 : vector<8x128xf32>
    %cst_57 = arith.constant 1.000000e+00 : f32
    %283 = vector.broadcast %cst_57 : f32 to vector<8x128xf32>
    %284 = arith.addf %283, %282 : vector<8x128xf32>
    %285 = arith.divf %283, %284 : vector<8x128xf32>
    %286 = arith.mulf %8, %285 : vector<8x128xf32>
    %287 = arith.subf %286, %10 : vector<8x128xf32>
    %288 = vector.extract_strided_slice %287 {offsets = [0, 0], sizes = [8, 32], strides = [1, 1]} : vector<8x128xf32> to vector<8x32xf32>
    %289 = vector.extract_strided_slice %287 {offsets = [0, 32], sizes = [8, 32], strides = [1, 1]} : vector<8x128xf32> to vector<8x32xf32>
    %290 = vector.extract_strided_slice %287 {offsets = [0, 64], sizes = [8, 32], strides = [1, 1]} : vector<8x128xf32> to vector<8x32xf32>
    %291 = vector.extract_strided_slice %287 {offsets = [0, 96], sizes = [8, 32], strides = [1, 1]} : vector<8x128xf32> to vector<8x32xf32>
    %292 = arith.mulf %289, %274 : vector<8x32xf32>
    %293 = arith.mulf %288, %290 : vector<8x32xf32>
    %294 = arith.addf %292, %293 : vector<8x32xf32>
    %295 = math.tanh %294 : vector<8x32xf32>
    %296 = arith.mulf %291, %295 : vector<8x32xf32>
    %297 = vector.extract_strided_slice %194 {offsets = [40, 0], sizes = [8, 128], strides = [1, 1]} : vector<64x128xf32> to vector<8x128xf32>
    %cst_58 = arith.constant dense<0.000000e+00> : vector<8x128xf32>
    %298 = tpu.matmul %296, %189, %cst_58 {dimension_numbers = #tpu.dot_dimension_numbers<[1], [0], [0], [1], [0, 0, 1, 1], [], []>} : vector<8x32xf32>, vector<32x128xf32>, vector<8x128xf32> -> vector<8x128xf32>
    %299 = arith.addf %297, %298 : vector<8x128xf32>
    %300 = arith.mulf %299, %8 : vector<8x128xf32>
    %301 = arith.negf %300 : vector<8x128xf32>
    %302 = math.exp %301 : vector<8x128xf32>
    %cst_59 = arith.constant 1.000000e+00 : f32
    %303 = vector.broadcast %cst_59 : f32 to vector<8x128xf32>
    %304 = arith.addf %303, %302 : vector<8x128xf32>
    %305 = arith.divf %303, %304 : vector<8x128xf32>
    %306 = arith.mulf %8, %305 : vector<8x128xf32>
    %307 = arith.subf %306, %10 : vector<8x128xf32>
    %308 = vector.extract_strided_slice %307 {offsets = [0, 0], sizes = [8, 32], strides = [1, 1]} : vector<8x128xf32> to vector<8x32xf32>
    %309 = vector.extract_strided_slice %307 {offsets = [0, 32], sizes = [8, 32], strides = [1, 1]} : vector<8x128xf32> to vector<8x32xf32>
    %310 = vector.extract_strided_slice %307 {offsets = [0, 64], sizes = [8, 32], strides = [1, 1]} : vector<8x128xf32> to vector<8x32xf32>
    %311 = vector.extract_strided_slice %307 {offsets = [0, 96], sizes = [8, 32], strides = [1, 1]} : vector<8x128xf32> to vector<8x32xf32>
    %312 = arith.mulf %309, %294 : vector<8x32xf32>
    %313 = arith.mulf %308, %310 : vector<8x32xf32>
    %314 = arith.addf %312, %313 : vector<8x32xf32>
    %315 = math.tanh %314 : vector<8x32xf32>
    %316 = arith.mulf %311, %315 : vector<8x32xf32>
    %317 = vector.extract_strided_slice %194 {offsets = [48, 0], sizes = [8, 128], strides = [1, 1]} : vector<64x128xf32> to vector<8x128xf32>
    %cst_60 = arith.constant dense<0.000000e+00> : vector<8x128xf32>
    %318 = tpu.matmul %316, %189, %cst_60 {dimension_numbers = #tpu.dot_dimension_numbers<[1], [0], [0], [1], [0, 0, 1, 1], [], []>} : vector<8x32xf32>, vector<32x128xf32>, vector<8x128xf32> -> vector<8x128xf32>
    %319 = arith.addf %317, %318 : vector<8x128xf32>
    %320 = arith.mulf %319, %8 : vector<8x128xf32>
    %321 = arith.negf %320 : vector<8x128xf32>
    %322 = math.exp %321 : vector<8x128xf32>
    %cst_61 = arith.constant 1.000000e+00 : f32
    %323 = vector.broadcast %cst_61 : f32 to vector<8x128xf32>
    %324 = arith.addf %323, %322 : vector<8x128xf32>
    %325 = arith.divf %323, %324 : vector<8x128xf32>
    %326 = arith.mulf %8, %325 : vector<8x128xf32>
    %327 = arith.subf %326, %10 : vector<8x128xf32>
    %328 = vector.extract_strided_slice %327 {offsets = [0, 0], sizes = [8, 32], strides = [1, 1]} : vector<8x128xf32> to vector<8x32xf32>
    %329 = vector.extract_strided_slice %327 {offsets = [0, 32], sizes = [8, 32], strides = [1, 1]} : vector<8x128xf32> to vector<8x32xf32>
    %330 = vector.extract_strided_slice %327 {offsets = [0, 64], sizes = [8, 32], strides = [1, 1]} : vector<8x128xf32> to vector<8x32xf32>
    %331 = vector.extract_strided_slice %327 {offsets = [0, 96], sizes = [8, 32], strides = [1, 1]} : vector<8x128xf32> to vector<8x32xf32>
    %332 = arith.mulf %329, %314 : vector<8x32xf32>
    %333 = arith.mulf %328, %330 : vector<8x32xf32>
    %334 = arith.addf %332, %333 : vector<8x32xf32>
    %335 = math.tanh %334 : vector<8x32xf32>
    %336 = arith.mulf %331, %335 : vector<8x32xf32>
    %337 = vector.extract_strided_slice %194 {offsets = [56, 0], sizes = [8, 128], strides = [1, 1]} : vector<64x128xf32> to vector<8x128xf32>
    %cst_62 = arith.constant dense<0.000000e+00> : vector<8x128xf32>
    %338 = tpu.matmul %336, %189, %cst_62 {dimension_numbers = #tpu.dot_dimension_numbers<[1], [0], [0], [1], [0, 0, 1, 1], [], []>} : vector<8x32xf32>, vector<32x128xf32>, vector<8x128xf32> -> vector<8x128xf32>
    %339 = arith.addf %337, %338 : vector<8x128xf32>
    %340 = arith.mulf %339, %8 : vector<8x128xf32>
    %341 = arith.negf %340 : vector<8x128xf32>
    %342 = math.exp %341 : vector<8x128xf32>
    %cst_63 = arith.constant 1.000000e+00 : f32
    %343 = vector.broadcast %cst_63 : f32 to vector<8x128xf32>
    %344 = arith.addf %343, %342 : vector<8x128xf32>
    %345 = arith.divf %343, %344 : vector<8x128xf32>
    %346 = arith.mulf %8, %345 : vector<8x128xf32>
    %347 = arith.subf %346, %10 : vector<8x128xf32>
    %348 = vector.extract_strided_slice %347 {offsets = [0, 0], sizes = [8, 32], strides = [1, 1]} : vector<8x128xf32> to vector<8x32xf32>
    %349 = vector.extract_strided_slice %347 {offsets = [0, 32], sizes = [8, 32], strides = [1, 1]} : vector<8x128xf32> to vector<8x32xf32>
    %350 = vector.extract_strided_slice %347 {offsets = [0, 64], sizes = [8, 32], strides = [1, 1]} : vector<8x128xf32> to vector<8x32xf32>
    %351 = vector.extract_strided_slice %347 {offsets = [0, 96], sizes = [8, 32], strides = [1, 1]} : vector<8x128xf32> to vector<8x32xf32>
    %352 = arith.mulf %349, %334 : vector<8x32xf32>
    %353 = arith.mulf %348, %350 : vector<8x32xf32>
    %354 = arith.addf %352, %353 : vector<8x32xf32>
    %355 = math.tanh %354 : vector<8x32xf32>
    %356 = arith.mulf %351, %355 : vector<8x32xf32>
    %c0_64 = arith.constant 0 : index
    %c0_65 = arith.constant 0 : index
    %357 = vector.load %arg7[%c0_64, %c0_65] : memref<32x1xf32, #tpu.memory_space<vmem>>, vector<32x1xf32>
    %cst_66 = arith.constant dense<0.000000e+00> : vector<8x1xf32>
    %358 = tpu.matmul %356, %357, %cst_66 {dimension_numbers = #tpu.dot_dimension_numbers<[1], [0], [0], [1], [0, 0, 1, 1], [], []>} : vector<8x32xf32>, vector<32x1xf32>, vector<8x1xf32> -> vector<8x1xf32>
    %c0_67 = arith.constant 0 : index
    %c0_68 = arith.constant 0 : index
    %359 = vector.load %arg8[%c0_67, %c0_68] : memref<1x1xf32, #tpu.memory_space<vmem>>, vector<1x1xf32>
    %360 = vector.broadcast %359 : vector<1x1xf32> to vector<8x1xf32>
    %361 = arith.addf %358, %360 : vector<8x1xf32>
    %c0_69 = arith.constant 0 : index
    %c0_70 = arith.constant 0 : index
    %362 = vector.load %arg9[%c0_69, %c0_70] : memref<8x1xf32, #tpu.memory_space<vmem>>, vector<8x1xf32>
    tpu.vector_store %arg9[%c0_69, %c0_70], %361 {strides = array<i32>} : memref<8x1xf32, #tpu.memory_space<vmem>>, vector<8x1xf32>,
    return
  }
}

</mosaic_0001>

<bundles_post_ra>
// kernel: lstm_onset_forward.1
= control target key start
LH: loop header
LB: loop body
LE: loop exit
PB: predicated region body
PF: predicated region fallthrough
CT: control target
= control target key end

     0   :  { %vm62_vm0 = vcmask 130048   ;;  %v2678_v0 = vmov 0.0|0.0   ;;  %vm2679_vm1 = vmmov 0   ;;  %v2680_v4 = vmov 0.0   ;;  %s2683_s25 = smov 32   ;;  %s3147_s1 = inlined_call_operand.vmem [shape: f32[16,128], index: 1, kind: input, shape index: {}]   ;;  %s3148_s2 = inlined_call_operand.vmem [shape: f32[32,128], index: 2, kind: input, shape index: {}]   ;;  %s3149_s0 = inlined_call_operand.vmem [shape: f32[64,16], index: 0, kind: input, shape index: {}]   ;;  %s3150_s3 = inlined_call_operand.vmem [shape: f32[1,128], index: 3, kind: input, shape index: {}]   ;;  %s3151_s4 = inlined_call_operand.vmem [shape: f32[32,128], index: 4, kind: input, shape index: {}]   ;;  %s3152_s5 = inlined_call_operand.vmem [shape: f32[32,128], index: 5, kind: input, shape index: {}]   ;;  %s3153_s6 = inlined_call_operand.vmem [shape: f32[1,128], index: 6, kind: input, shape index: {}]   ;;  %s3154_s7 = inlined_call_operand.vmem [shape: f32[32,1], index: 7, kind: input, shape index: {}]   ;;  %s3155_s8 = inlined_call_operand.<no memory space> [shape: f32[1,1], index: 8, kind: input, shape index: {}]   ;;  %s3156_s9 = inlined_call_operand.vmem [shape: f32[8,1], index: 9, kind: output, shape index: {}]  }
   0x1   :  { %2466 = vmatprep.subr.bf16.mxu1 %v2678_v0  ;;  %v41_v1 = vld [vmem:[%s3147_s1] sm:$0xff]  ;;  %v42_v2 = vld [vmem:[%s3147_s1 + $0x8] sm:$0xff]  ;;  %2263 = vmatprep.mubr.msk.f32.mxu1 %vm2679_vm1, %v2680_v4  ;;  %v45_v9 = vld [vmem:[%s3148_s2 + $0x10] sm:$0xff]  ;;  %v34_v13 = vlaneseq  ;;  %v2681_v19 = vmov 1.0   ;;  %vm192_vm5 = vcmask 261120   ;;  %vm2075_vm6 = vcmask 7168  }
   0x2   :  { %v43_v3 = vld [vmem:[%s3148_s2] sm:$0xff]  ;;  %v2462_v5 = vpack.c.bf16 %v42_v2, %v41_v1  ;;  %v44_v6 = vld [vmem:[%s3148_s2 + $0x8] sm:$0xff]  ;;  %v46_v10 = vld [vmem:[%s3148_s2 + $0x18] sm:$0xff] }
   0x3   :  { %v48_v7 = vld [vmem:[%s3149_s0] sm:$0xff]  ;;  %v2752_v8 = vpack.c.bf16 %v44_v6, %v43_v3  ;;  %v49_v11 = vld [vmem:[%s3149_s0 + $0x8] sm:$0xff]  ;;  %v2765_v12 = vpack.c.bf16 %v46_v10, %v45_v9  ;;  %v35_v14 = vand.u32 127, %v34_v13  ;;  %v50_v57 = vld [vmem:[%s3149_s0 + $0x10] sm:$0xff] }
   0x4   :  { %2243 = vmatprep.mubr.msk.f32.mxu0 %vm62_vm0, %v48_v7  ;;  %2463 = vmatprep.subr.bf16.mxu0 %v2462_v5  ;;  %v2786_v15 = vld [vmem:[%s3150_s3] ss:$0 sm:$0xff]  ;;  %s2682_s3 = smov 64   ;;  %v51_v58 = vld [vmem:[%s3149_s0 + $0x18] sm:$0xff]  ;;  %v53_v60 = vld [vmem:[%s3149_s0 + $0x28] sm:$0xff] }
   0x5   :  { %2468 = vmatpush3.bf16.msra.mxu1 %v2752_v8  ;;  %2465 = vmatpush3.bf16.msra.mxu0 %v2462_v5  ;;  %vm36_vm2 = vcmp.ge.s32.totalorder %v35_v14, 64  ;;  %vm37_vm3 = vcmp.lt.s32.totalorder %v35_v14, 96  ;;  %v52_v59 = vld [vmem:[%s3149_s0 + $0x20] sm:$0xff]  ;;  %v54_v61 = vld [vmem:[%s3149_s0 + $0x30] sm:$0xff]  ;;  %v55_v62 = vld [vmem:[%s3149_s0 + $0x38] sm:$0xff] }
   0x6   :  { %2469 = vmatprep.subr.bf16.mxu1 %v2678_v0  ;;  %2478 = vmatprep.subr.bf16.mxu0 %v2678_v0  ;;  %vm38_vm4 = vmand %vm36_vm2, %vm37_vm3 }
   0x7   :  { %v2789_v20 = vsel %vm38_vm4, 2.0, %v2681_v19 }
   0x8   :  { %2244 = vmatmul.mubr.msk.f32.vlgmr.msra.gmra.mrb[0].mxu0 %vm62_vm0, %v49_v11  ;;  %v2793_v28 = vadd.f32 -1.0, %v2789_v20 }
   0x9   :  { %2471 = vmatpush3.bf16.msra.mxu1 %v2765_v12  ;;  %2480 = vmatpush3.bf16.msra.mxu0 %v2752_v8 }
   0xa   :  { %2472 = vmatprep.subr.bf16.mxu1 %v2678_v0  ;;  %2481 = vmatprep.subr.bf16.mxu0 %v2678_v0 }
   0xb   :  { %2246 = vmatprep.mubr.msk.f32.mxu0 %vm62_vm0, %v50_v57 }
   0xc   :  { %2264 = vmatmul.mubr.f32.vlgmr.msra.gmra.mrb[0].mxu1 %v2680_v4  ;;  %2247 = vmatmul.mubr.msk.f32.gmra.mrb[2].mxu0 %vm62_vm0, %v51_v58 }
   0xd   :  { %2474 = vmatpush3.bf16.msra.mxu1 %v2752_v8  ;;  %2274 = vmatprep.mubr.msk.f32.mxu1 %vm2679_vm1, %v2680_v4 }
   0xe   :  { %2475 = vmatprep.subr.bf16.mxu1 %v2678_v0  ;;  %2483 = vmatpush3.bf16.msra.mxu0 %v2765_v12 }
   0xf   :  { %2490 = vmatprep.subr.bf16.mxu0 %v2678_v0  ;;  %2249 = vmatprep.mubr.msk.f32.mxu0 %vm62_vm0, %v52_v59 }
  0x10   :  { %2250 = vmatmul.mubr.msk.f32.gmra.mrb[4].mxu0 %vm62_vm0, %v53_v60 }
  0x11   :  { %2477 = vmatpush3.bf16.msra.mxu1 %v2765_v12  ;;  %2252 = vmatprep.mubr.msk.f32.mxu0 %vm62_vm0, %v54_v61 }
  0x12   :  { %2484 = vmatprep.subr.bf16.mxu1 %v2678_v0 }
  0x14   :  { %2253 = vmatmul.mubr.msk.f32.gmra.mrb[6].mxu0 %vm62_vm0, %v55_v62 }
  0x15   :  { %2285 = vmatprep.mubr.msk.f32.mxu0 %vm2679_vm1, %v2680_v4 }
  0xdb   :  { %v2245_v16 = vpop.f32.mrb[0].mxu0 }
  0xdc   :  { %v153_v17 = vpop.f32.mrb[1].mxu0  ;;  %v159_v41 = vadd.f32 %v2245_v16, %v2786_v15 }
  0xdd   :  { %v154_v18 = vadd.f32 %v2786_v15, %v153_v17 }
  0xdf   :  { %v262_v21 = vpop.f32.mrb[0].mxu1  ;;  %v2248_v3 = vpop.f32.mrb[2].mxu0 }
  0xe0   :  { %v266_v22 = vadd.f32 %v262_v21, %v154_v18  ;;  %v2265_v23 = vpop.f32.mrb[1].mxu1  ;;  %v163_v5 = vpop.f32.mrb[3].mxu0 }
  0xe1   :  { %v164_v13 = vadd.f32 %v2786_v15, %v163_v5 }
  0xe2   :  { %v267_v24 = vmul.f32 %v266_v22, %v2789_v20 }
  0xe3   :  { %v2843_v6 = vpop.f32.mrb[4].mxu0 }
  0xe4   :  { %v2091_v25 = vmul.f32 -1.442695, %v267_v24  ;;  %v2845_v7 = vpop.f32.mrb[5].mxu0 }
  0xe6   :  { %2582 = vpow2.f32 %v2091_v25 }
  0xe7   :  { %v2847_v9 = vpop.f32.mrb[6].mxu0 }
  0xe8   :  { %v2849_v10 = vpop.f32.mrb[7].mxu0 }
  0xf0   :  { %v2583_v26 = vpop.eup %2582 }
  0xf1   :  { %v271_v27 = vadd.f32 1.0, %v2583_v26 }
  0xf3   :  { %2584 = vrcp.f32 %v271_v27 }
  0xfd   :  { %v2585_v29 = vpop.eup %2584 }
  0xfe   :  { %v274_v30 = vmul.f32 %v2585_v29, %v2789_v20 }
 0x100   :  { %v275_v31 = vsub.f32 %v274_v30, %v2793_v28 }
 0x102   :  { %278 = vrot.lane.b32.xlu0 %v275_v31, %s2682_s3  ;;  %v276_v34 = vmul.f32 0.0, %v275_v31 }
 0x174   :  { %v279_v32 = vpop.permute.xlu0 %278 }
 0x175   :  { %v281_v33 = vmul.f32 %v279_v32, %v275_v31 }
 0x177   :  { %283 = vrot.lane.b32.xlu0 %v281_v33, %s2683_s25 }
 0x1e9   :  { %v284_v35 = vpop.permute.xlu0 %283 }
 0x1ea   :  { %v286_v36 = vadd.f32 %v284_v35, %v276_v34 }
 0x1ec   :  { %2586 = vtanh.f32 %v286_v36 }
 0x1f6   :  { %v2587_v37 = vpop.eup %2586 }
 0x1f7   :  { %289 = vrot.lane.b32.xlu1 %v2587_v37, %s2682_s3 }
 0x269   :  { %v290_v38 = vpop.permute.xlu1 %289 }
 0x26a   :  { %v292_v39 = vmul.f32 %v290_v38, %v275_v31 }
 0x26c   :  { %294 = vrot.lane.b32.xlu1 %v292_v39, %s2683_s25 }
 0x2de   :  { %v295_v40 = vpop.permute.xlu1 %294 }
 0x2df   :  { %297 = vst.msk [vmem:[#allocation2] sm:$0xff] %vm192_vm5, %v295_v40  ;;  %2275 = vmatmul.mubr.msk.f32.vlgmr.msra.gmra.mrb[2].mxu1 %vm192_vm5, %v295_v40 }
 0x2e0   :  { %2486 = vmatpush3.bf16.msra.mxu1 %v2752_v8  ;;  %2296 = vmatprep.mubr.msk.f32.mxu1 %vm2679_vm1, %v2680_v4 }
 0x2e1   :  { %2487 = vmatprep.subr.bf16.mxu1 %v2678_v0 }
 0x2e4   :  { %2489 = vmatpush3.bf16.msra.mxu1 %v2765_v12 }
 0x2e5   :  { %2496 = vmatprep.subr.bf16.mxu1 %v2678_v0 }
 0x3b2   :  { %v366_v42 = vpop.f32.mrb[2].mxu1 }
 0x3b3   :  { %v370_v43 = vadd.f32 %v366_v42, %v159_v41  ;;  %v2276_v44 = vpop.f32.mrb[3].mxu1 }
 0x3b5   :  { %v371_v45 = vmul.f32 %v370_v43, %v2789_v20 }
 0x3b7   :  { %v2093_v46 = vmul.f32 -1.442695, %v371_v45 }
 0x3b9   :  { %2588 = vpow2.f32 %v2093_v46 }
 0x3c3   :  { %v2589_v47 = vpop.eup %2588 }
 0x3c4   :  { %v375_v48 = vadd.f32 1.0, %v2589_v47 }
 0x3c6   :  { %2590 = vrcp.f32 %v375_v48 }
 0x3d0   :  { %v2591_v49 = vpop.eup %2590 }
 0x3d1   :  { %v378_v50 = vmul.f32 %v2591_v49, %v2789_v20 }
 0x3d3   :  { %v379_v51 = vsub.f32 %v378_v50, %v2793_v28 }
 0x3d5   :  { %382 = vrot.lane.b32.xlu0 %v379_v51, %s2682_s3  ;;  %v380_v54 = vmul.f32 %v379_v51, %v286_v36  ;;  %v169_v36 = vadd.f32 %v2248_v3, %v2786_v15 }
 0x447   :  { %v383_v52 = vpop.permute.xlu0 %382 }
 0x448   :  { %v385_v53 = vmul.f32 %v383_v52, %v379_v51 }
 0x44a   :  { %387 = vrot.lane.b32.xlu1 %v385_v53, %s2683_s25 }
 0x4bc   :  { %v388_v55 = vpop.permute.xlu1 %387 }
 0x4bd   :  { %v390_v56 = vadd.f32 %v388_v55, %v380_v54 }
 0x4bf   :  { %2592 = vtanh.f32 %v390_v56 }
 0x4c9   :  { %v2593_v63 = vpop.eup %2592 }
 0x4ca   :  { %393 = vrot.lane.b32.xlu0 %v2593_v63, %s2682_s3 }
 0x53c   :  { %v394_v1 = vpop.permute.xlu0 %393 }
 0x53d   :  { %v396_v2 = vmul.f32 %v394_v1, %v379_v51 }
 0x53f   :  { %398 = vrot.lane.b32.xlu1 %v396_v2, %s2683_s25 }
 0x5b1   :  { %v399_v11 = vpop.permute.xlu1 %398 }
 0x5b2   :  { %401 = vst.msk [vmem:[#allocation2 + $0x8] sm:$0xff] %vm192_vm5, %v399_v11  ;;  %2286 = vmatmul.mubr.msk.f32.vlgmr.msra.gmra.mrb[8].mxu0 %vm192_vm5, %v399_v11 }
 0x5b3   :  { %2492 = vmatpush3.bf16.msra.mxu0 %v2752_v8  ;;  %2307 = vmatprep.mubr.msk.f32.mxu0 %vm2679_vm1, %v2680_v4 }
 0x5b4   :  { %2493 = vmatprep.subr.bf16.mxu0 %v2678_v0 }
 0x5b7   :  { %2495 = vmatpush3.bf16.msra.mxu0 %v2765_v12 }
 0x5b8   :  { %2502 = vmatprep.subr.bf16.mxu0 %v2678_v0 }
 0x685   :  { %v470_v14 = vpop.f32.mrb[8].mxu0 }
 0x686   :  { %v474_v16 = vadd.f32 %v470_v14, %v164_v13  ;;  %v2287_v17 = vpop.f32.mrb[9].mxu0 }
 0x688   :  { %v475_v18 = vmul.f32 %v474_v16, %v2789_v20 }
 0x68a   :  { %v2095_v19 = vmul.f32 -1.442695, %v475_v18 }
 0x68c   :  { %2594 = vpow2.f32 %v2095_v19 }
 0x696   :  { %v2595_v21 = vpop.eup %2594 }
 0x697   :  { %v479_v22 = vadd.f32 1.0, %v2595_v21  ;;  %v179_v21 = vadd.f32 %v2843_v6, %v2786_v15 }
 0x699   :  { %2596 = vrcp.f32 %v479_v22 }
 0x6a3   :  { %v2597_v23 = vpop.eup %2596 }
 0x6a4   :  { %v482_v24 = vmul.f32 %v2597_v23, %v2789_v20 }
 0x6a6   :  { %v483_v25 = vsub.f32 %v482_v24, %v2793_v28 }
 0x6a8   :  { %486 = vrot.lane.b32.xlu0 %v483_v25, %s2682_s3  ;;  %v484_v29 = vmul.f32 %v483_v25, %v390_v56  ;;  %v174_v56 = vadd.f32 %v2786_v15, %v2845_v7 }
 0x71a   :  { %v487_v26 = vpop.permute.xlu0 %486 }
 0x71b   :  { %v489_v27 = vmul.f32 %v487_v26, %v483_v25 }
 0x71d   :  { %491 = vrot.lane.b32.xlu1 %v489_v27, %s2683_s25 }
 0x78f   :  { %v492_v30 = vpop.permute.xlu1 %491 }
 0x790   :  { %v494_v31 = vadd.f32 %v492_v30, %v484_v29 }
 0x792   :  { %2598 = vtanh.f32 %v494_v31 }
 0x79c   :  { %v2599_v32 = vpop.eup %2598 }
 0x79d   :  { %497 = vrot.lane.b32.xlu0 %v2599_v32, %s2682_s3 }
 0x80f   :  { %v498_v33 = vpop.permute.xlu0 %497 }
 0x810   :  { %v500_v34 = vmul.f32 %v498_v33, %v483_v25 }
 0x812   :  { %502 = vrot.lane.b32.xlu1 %v500_v34, %s2683_s25 }
 0x884   :  { %v503_v35 = vpop.permute.xlu1 %502 }
 0x885   :  { %505 = vst.msk [vmem:[#allocation2 + $0x10] sm:$0xff] %vm192_vm5, %v503_v35  ;;  %2297 = vmatmul.mubr.msk.f32.vlgmr.msra.gmra.mrb[4].mxu1 %vm192_vm5, %v503_v35  ;;  %v1026_v35 = vld [vmem:[%s3151_s4] sm:$0xff] }
 0x886   :  { %2498 = vmatpush3.bf16.msra.mxu1 %v2752_v8  ;;  %2318 = vmatprep.mubr.msk.f32.mxu1 %vm2679_vm1, %v2680_v4 }
 0x887   :  { %2499 = vmatprep.subr.bf16.mxu1 %v2678_v0 }
 0x88a   :  { %2501 = vmatpush3.bf16.msra.mxu1 %v2765_v12 }
 0x88b   :  { %2508 = vmatprep.subr.bf16.mxu1 %v2678_v0 }
 0x958   :  { %v574_v37 = vpop.f32.mrb[4].mxu1 }
 0x959   :  { %v578_v38 = vadd.f32 %v574_v37, %v169_v36  ;;  %v2298_v39 = vpop.f32.mrb[5].mxu1  ;;  %v1027_v36 = vld [vmem:[%s3151_s4 + $0x8] sm:$0xff] }
 0x95a   :  { %v2514_v37 = vpack.c.bf16 %v1027_v36, %v1026_v35 }
 0x95b   :  { %v579_v40 = vmul.f32 %v578_v38, %v2789_v20 }
 0x95d   :  { %v2097_v41 = vmul.f32 -1.442695, %v579_v40 }
 0x95f   :  { %2600 = vpow2.f32 %v2097_v41  ;;  %v1028_v41 = vld [vmem:[%s3151_s4 + $0x10] sm:$0xff] }
 0x969   :  { %v2601_v42 = vpop.eup %2600 }
 0x96a   :  { %v583_v43 = vadd.f32 1.0, %v2601_v42  ;;  %v1029_v42 = vld [vmem:[%s3151_s4 + $0x18] sm:$0xff] }
 0x96c   :  { %2602 = vrcp.f32 %v583_v43  ;;  %v2518_v43 = vpack.c.bf16 %v1029_v42, %v1028_v41 }
 0x976   :  { %v2603_v44 = vpop.eup %2602 }
 0x977   :  { %v586_v45 = vmul.f32 %v2603_v44, %v2789_v20 }
 0x979   :  { %v587_v46 = vsub.f32 %v586_v45, %v2793_v28  ;;  %v1035_v45 = vld [vmem:[#allocation2] sm:$0xff] }
 0x97b   :  { %590 = vrot.lane.b32.xlu0 %v587_v46, %s2682_s3  ;;  %v588_v49 = vmul.f32 %v587_v46, %v494_v31 }
 0x9ed   :  { %v591_v47 = vpop.permute.xlu0 %590 }
 0x9ee   :  { %v593_v48 = vmul.f32 %v591_v47, %v587_v46  ;;  %v1037_v47 = vld [vmem:[#allocation2 + $0x10] sm:$0xff] }
 0x9f0   :  { %595 = vrot.lane.b32.xlu1 %v593_v48, %s2683_s25 }
 0xa62   :  { %v596_v50 = vpop.permute.xlu1 %595 }
 0xa63   :  { %v598_v51 = vadd.f32 %v596_v50, %v588_v49 }
 0xa65   :  { %2604 = vtanh.f32 %v598_v51 }
 0xa6f   :  { %v2605_v52 = vpop.eup %2604 }
 0xa70   :  { %601 = vrot.lane.b32.xlu0 %v2605_v52, %s2682_s3 }
 0xae2   :  { %v602_v53 = vpop.permute.xlu0 %601 }
 0xae3   :  { %v604_v54 = vmul.f32 %v602_v53, %v587_v46  ;;  %v1036_v46 = vld [vmem:[#allocation2 + $0x8] sm:$0xff] }
 0xae5   :  { %606 = vrot.lane.b32.xlu1 %v604_v54, %s2683_s25 }
 0xb57   :  { %v607_v55 = vpop.permute.xlu1 %606 }
 0xb58   :  { %609 = vst.msk [vmem:[#allocation2 + $0x18] sm:$0xff] %vm192_vm5, %v607_v55  ;;  %2308 = vmatmul.mubr.msk.f32.vlgmr.msra.gmra.mrb[10].mxu0 %vm192_vm5, %v607_v55 }
 0xb59   :  { %2504 = vmatpush3.bf16.msra.mxu0 %v2752_v8  ;;  %2329 = vmatprep.mubr.msk.f32.mxu0 %vm2679_vm1, %v2680_v4 }
 0xb5a   :  { %2505 = vmatprep.subr.bf16.mxu0 %v2678_v0 }
 0xb5d   :  { %2507 = vmatpush3.bf16.msra.mxu0 %v2765_v12 }
 0xb5e   :  { %2515 = vmatprep.subr.bf16.mxu0 %v2514_v37 }
 0xb5f   :  { %v1038_v48 = vld [vmem:[#allocation2 + $0x18] sm:$0xff] }
 0xc2b   :  { %v678_v57 = vpop.f32.mrb[10].mxu0 }
 0xc2c   :  { %v682_v58 = vadd.f32 %v678_v57, %v174_v56  ;;  %v2309_v59 = vpop.f32.mrb[11].mxu0 }
 0xc2e   :  { %v683_v60 = vmul.f32 %v682_v58, %v2789_v20 }
 0xc30   :  { %v2099_v61 = vmul.f32 -1.442695, %v683_v60 }
 0xc32   :  { %2606 = vpow2.f32 %v2099_v61 }
 0xc3c   :  { %v2607_v62 = vpop.eup %2606 }
 0xc3d   :  { %v687_v63 = vadd.f32 1.0, %v2607_v62 }
 0xc3f   :  { %2608 = vrcp.f32 %v687_v63 }
 0xc49   :  { %v2609_v1 = vpop.eup %2608 }
 0xc4a   :  { %v690_v2 = vmul.f32 %v2609_v1, %v2789_v20 }
 0xc4c   :  { %v691_v3 = vsub.f32 %v690_v2, %v2793_v28 }
 0xc4e   :  { %694 = vrot.lane.b32.xlu0 %v691_v3, %s2682_s3  ;;  %v692_v7 = vmul.f32 %v691_v3, %v598_v51  ;;  %v184_v51 = vadd.f32 %v2786_v15, %v2849_v10 }
 0xcc0   :  { %v695_v5 = vpop.permute.xlu0 %694 }
 0xcc1   :  { %v697_v11 = vmul.f32 %v695_v5, %v691_v3 }
 0xcc3   :  { %699 = vrot.lane.b32.xlu1 %v697_v11, %s2683_s25 }
 0xd35   :  { %v700_v13 = vpop.permute.xlu1 %699 }
 0xd36   :  { %v702_v14 = vadd.f32 %v700_v13, %v692_v7 }
 0xd38   :  { %2610 = vtanh.f32 %v702_v14 }
 0xd42   :  { %v2611_v16 = vpop.eup %2610 }
 0xd43   :  { %705 = vrot.lane.b32.xlu0 %v2611_v16, %s2682_s3 }
 0xdb5   :  { %v706_v17 = vpop.permute.xlu0 %705 }
 0xdb6   :  { %v708_v18 = vmul.f32 %v706_v17, %v691_v3  ;;  %v1030_v17 = vld [vmem:[%s3152_s5] sm:$0xff] }
 0xdb8   :  { %710 = vrot.lane.b32.xlu1 %v708_v18, %s2683_s25  ;;  %v1031_v18 = vld [vmem:[%s3152_s5 + $0x8] sm:$0xff] }
 0xe2a   :  { %v711_v19 = vpop.permute.xlu1 %710 }
 0xe2b   :  { %713 = vst.msk [vmem:[#allocation2 + $0x20] sm:$0xff] %vm192_vm5, %v711_v19  ;;  %2319 = vmatmul.mubr.msk.f32.vlgmr.msra.gmra.mrb[6].mxu1 %vm192_vm5, %v711_v19  ;;  %v2964_v19 = vpack.c.bf16 %v1031_v18, %v1030_v17 }
 0xe2c   :  { %2510 = vmatpush3.bf16.msra.mxu1 %v2752_v8  ;;  %2340 = vmatprep.mubr.msk.f32.mxu1 %vm2679_vm1, %v2680_v4 }
 0xe2d   :  { %2511 = vmatprep.subr.bf16.mxu1 %v2678_v0 }
 0xe30   :  { %2513 = vmatpush3.bf16.msra.mxu1 %v2765_v12 }
 0xe31   :  { %2522 = vmatprep.subr.bf16.mxu1 %v2678_v0 }
 0xe32   :  { %v1039_v49 = vld [vmem:[#allocation2 + $0x20] sm:$0xff] }
 0xefe   :  { %v782_v22 = vpop.f32.mrb[6].mxu1 }
 0xeff   :  { %v786_v23 = vadd.f32 %v782_v22, %v179_v21  ;;  %v2320_v24 = vpop.f32.mrb[7].mxu1  ;;  %v1032_v21 = vld [vmem:[%s3152_s5 + $0x10] sm:$0xff]  ;;  %v1033_v22 = vld [vmem:[%s3152_s5 + $0x18] sm:$0xff] }
 0xf01   :  { %v787_v25 = vmul.f32 %v786_v23, %v2789_v20  ;;  %v2974_v23 = vpack.c.bf16 %v1033_v22, %v1032_v21 }
 0xf03   :  { %v2101_v26 = vmul.f32 -1.442695, %v787_v25 }
 0xf05   :  { %2612 = vpow2.f32 %v2101_v26 }
 0xf0f   :  { %v2613_v8 = vpop.eup %2612 }
 0xf10   :  { %v791_v27 = vadd.f32 1.0, %v2613_v8 }
 0xf12   :  { %2614 = vrcp.f32 %v791_v27  ;;  %v189_v27 = vadd.f32 %v2847_v9, %v2786_v15 }
 0xf1c   :  { %v2615_v29 = vpop.eup %2614 }
 0xf1d   :  { %v794_v30 = vmul.f32 %v2615_v29, %v2789_v20 }
 0xf1f   :  { %v795_v12 = vsub.f32 %v794_v30, %v2793_v28 }
 0xf21   :  { %798 = vrot.lane.b32.xlu0 %v795_v12, %s2682_s3  ;;  %v796_v6 = vmul.f32 %v795_v12, %v702_v14 }
 0xf93   :  { %v799_v31 = vpop.permute.xlu0 %798 }
 0xf94   :  { %v801_v32 = vmul.f32 %v799_v31, %v795_v12  ;;  %v3000_v31 = vld [vmem:[%s3153_s6] ss:$0 sm:$0xff] }
 0xf96   :  { %803 = vrot.lane.b32.xlu1 %v801_v32, %s2683_s25 }
0x1008   :  { %v804_v33 = vpop.permute.xlu1 %803 }
0x1009   :  { %v806_v34 = vadd.f32 %v804_v33, %v796_v6 }
0x100b   :  { %2616 = vtanh.f32 %v806_v34 }
0x1015   :  { %v2617_v38 = vpop.eup %2616 }
0x1016   :  { %809 = vrot.lane.b32.xlu0 %v2617_v38, %s2682_s3 }
0x1088   :  { %v810_v39 = vpop.permute.xlu0 %809 }
0x1089   :  { %v812_v40 = vmul.f32 %v810_v39, %v795_v12 }
0x108b   :  { %814 = vrot.lane.b32.xlu1 %v812_v40, %s2683_s25 }
0x10fd   :  { %v815_v44 = vpop.permute.xlu1 %814 }
0x10fe   :  { %817 = vst.msk [vmem:[#allocation2 + $0x28] sm:$0xff] %vm192_vm5, %v815_v44  ;;  %2330 = vmatmul.mubr.msk.f32.vlgmr.msra.gmra.mrb[12].mxu0 %vm192_vm5, %v815_v44 }
0x10ff   :  { %2517 = vmatpush3.bf16.msra.mxu0 %v2514_v37  ;;  %2351 = vmatprep.mubr.msk.f32.mxu0 %vm192_vm5, %v1035_v45 }
0x1100   :  { %2519 = vmatprep.subr.bf16.mxu0 %v2518_v43 }
0x1103   :  { %2521 = vmatpush3.bf16.msra.mxu0 %v2518_v43 }
0x1104   :  { %2534 = vmatprep.subr.bf16.mxu0 %v2678_v0 }
0x1105   :  { %v1040_v50 = vld [vmem:[#allocation2 + $0x28] sm:$0xff] }
0x1106   :  { %2352 = vmatmul.mubr.msk.f32.vlgmr.msra.gmra.mrb[14].mxu0 %vm192_vm5, %v1036_v46 }
0x1107   :  { %2354 = vmatprep.mubr.msk.f32.mxu0 %vm192_vm5, %v1037_v47  ;;  %2536 = vmatpush3.bf16.msra.mxu0 %v2964_v19 }
0x1108   :  { %2537 = vmatprep.subr.bf16.mxu0 %v2678_v0 }
0x110a   :  { %2355 = vmatmul.mubr.msk.f32.gmra.mrb[16].mxu0 %vm192_vm5, %v1038_v48 }
0x110b   :  { %2357 = vmatprep.mubr.msk.f32.mxu0 %vm192_vm5, %v1039_v49  ;;  %2539 = vmatpush3.bf16.msra.mxu0 %v2974_v23 }
0x110c   :  { %2546 = vmatprep.subr.bf16.mxu0 %v2678_v0 }
0x110e   :  { %2358 = vmatmul.mubr.msk.f32.gmra.mrb[18].mxu0 %vm192_vm5, %v1040_v50 }
0x11d1   :  { %v886_v52 = vpop.f32.mrb[12].mxu0 }
0x11d2   :  { %v890_v53 = vadd.f32 %v886_v52, %v184_v51  ;;  %v2331_v54 = vpop.f32.mrb[13].mxu0 }
0x11d4   :  { %v891_v55 = vmul.f32 %v890_v53, %v2789_v20 }
0x11d6   :  { %v2103_v56 = vmul.f32 -1.442695, %v891_v55 }
0x11d8   :  { %2618 = vpow2.f32 %v2103_v56 }
0x11d9   :  { %v2940_v57 = vpop.f32.mrb[14].mxu0 }
0x11da   :  { %v1139_v58 = vpop.f32.mrb[15].mxu0 }
0x11db   :  { %v1140_v32 = vadd.f32 %v3000_v31, %v1139_v58 }
0x11dd   :  { %v2942_v59 = vpop.f32.mrb[16].mxu0 }
0x11de   :  { %v2944_v60 = vpop.f32.mrb[17].mxu0 }
0x11e1   :  { %v2946_v61 = vpop.f32.mrb[18].mxu0 }
0x11e2   :  { %v2619_v62 = vpop.eup %2618  ;;  %v2948_v63 = vpop.f32.mrb[19].mxu0 }
0x11e3   :  { %v895_v10 = vadd.f32 1.0, %v2619_v62 }
0x11e5   :  { %2620 = vrcp.f32 %v895_v10 }
0x11ef   :  { %v2621_v1 = vpop.eup %2620 }
0x11f0   :  { %v898_v2 = vmul.f32 %v2621_v1, %v2789_v20 }
0x11f2   :  { %v899_v3 = vsub.f32 %v898_v2, %v2793_v28 }
0x11f4   :  { %902 = vrot.lane.b32.xlu0 %v899_v3, %s2682_s3  ;;  %v900_v7 = vmul.f32 %v899_v3, %v806_v34 }
0x1266   :  { %v903_v5 = vpop.permute.xlu0 %902 }
0x1267   :  { %v905_v11 = vmul.f32 %v903_v5, %v899_v3 }
0x1269   :  { %907 = vrot.lane.b32.xlu1 %v905_v11, %s2683_s25  ;;  %v1145_v11 = vadd.f32 %v2940_v57, %v3000_v31 }
0x12db   :  { %v908_v13 = vpop.permute.xlu1 %907 }
0x12dc   :  { %v2954_v14 = vadd.f32 %v908_v13, %v900_v7 }
0x12de   :  { %2622 = vtanh.f32 %v2954_v14 }
0x12e8   :  { %v2623_v16 = vpop.eup %2622 }
0x12e9   :  { %913 = vrot.lane.b32.xlu0 %v2623_v16, %s2682_s3 }
0x135b   :  { %v914_v24 = vpop.permute.xlu0 %913 }
0x135c   :  { %v916_v25 = vmul.f32 %v914_v24, %v899_v3 }
0x135e   :  { %918 = vrot.lane.b32.xlu1 %v916_v25, %s2683_s25 }
0x13d0   :  { %v919_v26 = vpop.permute.xlu1 %918 }
0x13d1   :  { %921 = vst.msk [vmem:[#allocation2 + $0x30] sm:$0xff] %vm192_vm5, %v919_v26  ;;  %2341 = vmatmul.mubr.msk.f32.vlgmr.msra.gmra.mrb[8].mxu1 %vm192_vm5, %v919_v26 }
0x13d2   :  { %2524 = vmatpush3.bf16.msra.mxu1 %v2964_v19  ;;  %2371 = vmatprep.mubr.msk.f32.mxu1 %vm2679_vm1, %v2680_v4 }
0x13d3   :  { %2525 = vmatprep.subr.bf16.mxu1 %v2678_v0 }
0x13d6   :  { %2527 = vmatpush3.bf16.msra.mxu1 %v2974_v23 }
0x13d7   :  { %2528 = vmatprep.subr.bf16.mxu1 %v2678_v0 }
0x13d8   :  { %v1041_v8 = vld [vmem:[#allocation2 + $0x30] sm:$0xff] }
0x13d9   :  { %2372 = vmatmul.mubr.f32.vlgmr.msra.gmra.mrb[10].mxu1 %v2680_v4  ;;  %2360 = vmatprep.mubr.msk.f32.mxu0 %vm192_vm5, %v1041_v8 }
0x13da   :  { %2530 = vmatpush3.bf16.msra.mxu1 %v2964_v19  ;;  %2382 = vmatprep.mubr.msk.f32.mxu1 %vm2679_vm1, %v2680_v4 }
0x13db   :  { %2531 = vmatprep.subr.bf16.mxu1 %v2678_v0 }
0x13de   :  { %2533 = vmatpush3.bf16.msra.mxu1 %v2974_v23 }
0x13df   :  { %2540 = vmatprep.subr.bf16.mxu1 %v2678_v0 }
0x14a4   :  { %v990_v29 = vpop.f32.mrb[8].mxu1 }
0x14a5   :  { %v994_v30 = vadd.f32 %v990_v29, %v189_v27  ;;  %v2342_v12 = vpop.f32.mrb[9].mxu1 }
0x14a7   :  { %v995_v42 = vmul.f32 %v994_v30, %v2789_v20 }
0x14a9   :  { %v2105_v43 = vmul.f32 -1.442695, %v995_v42 }
0x14ac   :  { %v1244_v6 = vpop.f32.mrb[10].mxu1 }
0x14ad   :  { %v1248_v33 = vadd.f32 %v1244_v6, %v1140_v32  ;;  %v2373_v34 = vpop.f32.mrb[11].mxu1 }
0x14af   :  { %v1249_v35 = vmul.f32 %v1248_v33, %v2789_v20 }
0x14b1   :  { %v2115_v36 = vmul.f32 -1.442695, %v1249_v35 }
0x14b3   :  { %2624 = vpow2.f32 %v2115_v36 }
0x14bd   :  { %v2625_v37 = vpop.eup %2624 }
0x14be   :  { %v1253_v38 = vadd.f32 1.0, %v2625_v37  ;;  %v1150_v37 = vadd.f32 %v3000_v31, %v2944_v60 }
0x14c0   :  { %2626 = vrcp.f32 %v1253_v38 }
0x14c1   :  { %2628 = vpow2.f32 %v2105_v43 }
0x14ca   :  { %v2627_v15 = vpop.eup %2626 }
0x14cb   :  { %v1256_v9 = vmul.f32 %v2627_v15, %v2789_v20  ;;  %v2629_v44 = vpop.eup %2628 }
0x14cc   :  { %v999_v45 = vadd.f32 1.0, %v2629_v44 }
0x14cd   :  { %v1257_v39 = vsub.f32 %v1256_v9, %v2793_v28 }
0x14ce   :  { %2630 = vrcp.f32 %v999_v45 }
0x14cf   :  { %1260 = vrot.lane.b32.xlu0 %v1257_v39, %s2682_s3  ;;  %v1258_v46 = vmul.f32 0.0, %v1257_v39 }
0x14d8   :  { %v2631_v49 = vpop.eup %2630 }
0x14d9   :  { %v1002_v50 = vmul.f32 %v2631_v49, %v2789_v20 }
0x14db   :  { %v1003_v52 = vsub.f32 %v1002_v50, %v2793_v28 }
0x14dd   :  { %v1004_v62 = vmul.f32 %v1003_v52, %v2954_v14 }
0x1541   :  { %v1261_v40 = vpop.permute.xlu0 %1260 }
0x1542   :  { %v1263_v41 = vmul.f32 %v1261_v40, %v1257_v39 }
0x1544   :  { %1265 = vrot.lane.b32.xlu1 %v1263_v41, %s2683_s25 }
0x15b6   :  { %v1266_v47 = vpop.permute.xlu1 %1265 }
0x15b7   :  { %v1268_v48 = vadd.f32 %v1266_v47, %v1258_v46 }
0x15b9   :  { %2632 = vtanh.f32 %v1268_v48 }
0x15c3   :  { %v2633_v51 = vpop.eup %2632 }
0x15c4   :  { %1271 = vrot.lane.b32.xlu0 %v2633_v51, %s2682_s3 }
0x15c8   :  { %1006 = vrot.lane.b32.xlu0 %v1003_v52, %s2682_s3 }
0x1636   :  { %v1272_v53 = vpop.permute.xlu0 %1271 }
0x1637   :  { %v1274_v54 = vmul.f32 %v1272_v53, %v1257_v39 }
0x1639   :  { %1276 = vrot.lane.b32.xlu1 %v1274_v54, %s2683_s25  ;;  %v1155_v54 = vadd.f32 %v2942_v59, %v3000_v31 }
0x163a   :  { %v1007_v55 = vpop.permute.xlu0 %1006 }
0x163b   :  { %v1009_v56 = vmul.f32 %v1007_v55, %v1003_v52 }
0x163d   :  { %1011 = vrot.lane.b32.xlu0 %v1009_v56, %s2683_s25 }
0x16ab   :  { %v1277_v58 = vpop.permute.xlu1 %1276 }
0x16ac   :  { %2383 = vmatmul.mubr.msk.f32.vlgmr.msra.gmra.mrb[12].mxu1 %vm192_vm5, %v1277_v58 }
0x16ad   :  { %2542 = vmatpush3.bf16.msra.mxu1 %v2964_v19  ;;  %2404 = vmatprep.mubr.msk.f32.mxu1 %vm2679_vm1, %v2680_v4 }
0x16ae   :  { %2543 = vmatprep.subr.bf16.mxu1 %v2678_v0 }
0x16af   :  { %v1012_v10 = vpop.permute.xlu0 %1011 }
0x16b0   :  { %v1014_v1 = vadd.f32 %v1012_v10, %v1004_v62 }
0x16b1   :  { %2545 = vmatpush3.bf16.msra.mxu1 %v2974_v23 }
0x16b2   :  { %2634 = vtanh.f32 %v1014_v1  ;;  %2552 = vmatprep.subr.bf16.mxu1 %v2678_v0 }
0x16bc   :  { %v2635_v2 = vpop.eup %2634 }
0x16bd   :  { %1017 = vrot.lane.b32.xlu0 %v2635_v2, %s2682_s3 }
0x172f   :  { %v1018_v3 = vpop.permute.xlu0 %1017 }
0x1730   :  { %v1020_v5 = vmul.f32 %v1018_v3, %v1003_v52 }
0x1732   :  { %1022 = vrot.lane.b32.xlu0 %v1020_v5, %s2683_s25 }
0x177f   :  { %v1346_v7 = vpop.f32.mrb[12].mxu1 }
0x1780   :  { %v1350_v13 = vadd.f32 %v1346_v7, %v1145_v11  ;;  %v2384_v14 = vpop.f32.mrb[13].mxu1 }
0x1782   :  { %v1351_v16 = vmul.f32 %v1350_v13, %v2789_v20 }
0x1784   :  { %v2117_v17 = vmul.f32 -1.442695, %v1351_v16 }
0x1786   :  { %2636 = vpow2.f32 %v2117_v17 }
0x1790   :  { %v2637_v18 = vpop.eup %2636 }
0x1791   :  { %v1355_v21 = vadd.f32 1.0, %v2637_v18 }
0x1793   :  { %2638 = vrcp.f32 %v1355_v21 }
0x179d   :  { %v2639_v22 = vpop.eup %2638 }
0x179e   :  { %v1358_v24 = vmul.f32 %v2639_v22, %v2789_v20 }
0x17a0   :  { %v1359_v25 = vsub.f32 %v1358_v24, %v2793_v28  ;;  %v1160_v24 = vadd.f32 %v3000_v31, %v2948_v63 }
0x17a2   :  { %1362 = vrot.lane.b32.xlu1 %v1359_v25, %s2682_s3  ;;  %v1360_v12 = vmul.f32 %v1359_v25, %v1268_v48 }
0x17a4   :  { %v1023_v26 = vpop.permute.xlu0 %1022 }
0x17a5   :  { %1025 = vst.msk [vmem:[#allocation2 + $0x38] sm:$0xff] %vm192_vm5, %v1023_v26 }
0x17ac   :  { %v1042_v57 = vld [vmem:[#allocation2 + $0x38] sm:$0xff] }
0x17ad   :  { %2361 = vmatmul.mubr.msk.f32.gmra.mrb[20].mxu0 %vm192_vm5, %v1042_v57 }
0x17ae   :  { %2393 = vmatprep.mubr.msk.f32.mxu0 %vm2679_vm1, %v2680_v4 }
0x1814   :  { %v1363_v8 = vpop.permute.xlu1 %1362 }
0x1815   :  { %v1365_v27 = vmul.f32 %v1363_v8, %v1359_v25 }
0x1817   :  { %1367 = vrot.lane.b32.xlu1 %v1365_v27, %s2683_s25 }
0x1880   :  { %v3036_v29 = vpop.f32.mrb[20].mxu0 }
0x1881   :  { %v3038_v30 = vpop.f32.mrb[21].mxu0 }
0x1889   :  { %v1368_v32 = vpop.permute.xlu1 %1367 }
0x188a   :  { %v1370_v6 = vadd.f32 %v1368_v32, %v1360_v12 }
0x188c   :  { %2640 = vtanh.f32 %v1370_v6 }
0x1896   :  { %v2641_v33 = vpop.eup %2640 }
0x1897   :  { %1373 = vrot.lane.b32.xlu1 %v2641_v33, %s2682_s3 }
0x1909   :  { %v1374_v34 = vpop.permute.xlu1 %1373 }
0x190a   :  { %v1376_v35 = vmul.f32 %v1374_v34, %v1359_v25 }
0x190c   :  { %1378 = vrot.lane.b32.xlu1 %v1376_v35, %s2683_s25 }
0x197e   :  { %v1379_v36 = vpop.permute.xlu1 %1378 }
0x197f   :  { %2394 = vmatmul.mubr.msk.f32.vlgmr.msra.gmra.mrb[22].mxu0 %vm192_vm5, %v1379_v36 }
0x1980   :  { %2548 = vmatpush3.bf16.msra.mxu0 %v2964_v19  ;;  %2415 = vmatprep.mubr.msk.f32.mxu0 %vm2679_vm1, %v2680_v4 }
0x1981   :  { %2549 = vmatprep.subr.bf16.mxu0 %v2678_v0 }
0x1984   :  { %2551 = vmatpush3.bf16.msra.mxu0 %v2974_v23 }
0x1985   :  { %2558 = vmatprep.subr.bf16.mxu0 %v2678_v0 }
0x1a52   :  { %v1448_v38 = vpop.f32.mrb[22].mxu0 }
0x1a53   :  { %v1452_v15 = vadd.f32 %v1448_v38, %v1150_v37  ;;  %v2395_v9 = vpop.f32.mrb[23].mxu0 }
0x1a55   :  { %v1453_v39 = vmul.f32 %v1452_v15, %v2789_v20 }
0x1a57   :  { %v2119_v40 = vmul.f32 -1.442695, %v1453_v39 }
0x1a59   :  { %2642 = vpow2.f32 %v2119_v40 }
0x1a63   :  { %v2643_v41 = vpop.eup %2642 }
0x1a64   :  { %v1457_v42 = vadd.f32 1.0, %v2643_v41  ;;  %v1165_v41 = vadd.f32 %v2946_v61, %v3000_v31 }
0x1a66   :  { %2644 = vrcp.f32 %v1457_v42 }
0x1a70   :  { %v2645_v43 = vpop.eup %2644 }
0x1a71   :  { %v1460_v44 = vmul.f32 %v2645_v43, %v2789_v20 }
0x1a73   :  { %v1461_v45 = vsub.f32 %v1460_v44, %v2793_v28 }
0x1a75   :  { %1464 = vrot.lane.b32.xlu0 %v1461_v45, %s2682_s3  ;;  %v1462_v60 = vmul.f32 %v1461_v45, %v1370_v6 }
0x1ae7   :  { %v1465_v46 = vpop.permute.xlu0 %1464 }
0x1ae8   :  { %v1467_v47 = vmul.f32 %v1465_v46, %v1461_v45 }
0x1aea   :  { %1469 = vrot.lane.b32.xlu1 %v1467_v47, %s2683_s25 }
0x1b5c   :  { %v1470_v48 = vpop.permute.xlu1 %1469 }
0x1b5d   :  { %v1472_v49 = vadd.f32 %v1470_v48, %v1462_v60 }
0x1b5f   :  { %2646 = vtanh.f32 %v1472_v49 }
0x1b69   :  { %v2647_v50 = vpop.eup %2646 }
0x1b6a   :  { %1475 = vrot.lane.b32.xlu0 %v2647_v50, %s2682_s3 }
0x1bdc   :  { %v1476_v51 = vpop.permute.xlu0 %1475 }
0x1bdd   :  { %v1478_v52 = vmul.f32 %v1476_v51, %v1461_v45 }
0x1bdf   :  { %1480 = vrot.lane.b32.xlu1 %v1478_v52, %s2683_s25 }
0x1c51   :  { %v1481_v53 = vpop.permute.xlu1 %1480 }
0x1c52   :  { %2405 = vmatmul.mubr.msk.f32.vlgmr.msra.gmra.mrb[14].mxu1 %vm192_vm5, %v1481_v53 }
0x1c53   :  { %2554 = vmatpush3.bf16.msra.mxu1 %v2964_v19  ;;  %2426 = vmatprep.mubr.msk.f32.mxu1 %vm2679_vm1, %v2680_v4 }
0x1c54   :  { %2555 = vmatprep.subr.bf16.mxu1 %v2678_v0 }
0x1c57   :  { %2557 = vmatpush3.bf16.msra.mxu1 %v2974_v23 }
0x1c58   :  { %2564 = vmatprep.subr.bf16.mxu1 %v2678_v0 }
0x1d25   :  { %v1550_v55 = vpop.f32.mrb[14].mxu1 }
0x1d26   :  { %v1554_v56 = vadd.f32 %v1550_v55, %v1155_v54  ;;  %v2406_v58 = vpop.f32.mrb[15].mxu1 }
0x1d27   :  { %v1170_v58 = vadd.f32 %v3000_v31, %v3038_v30 }
0x1d28   :  { %v1555_v62 = vmul.f32 %v1554_v56, %v2789_v20 }
0x1d2a   :  { %v2121_v10 = vmul.f32 -1.442695, %v1555_v62 }
0x1d2c   :  { %2648 = vpow2.f32 %v2121_v10 }
0x1d36   :  { %v2649_v1 = vpop.eup %2648 }
0x1d37   :  { %v1559_v2 = vadd.f32 1.0, %v2649_v1 }
0x1d39   :  { %2650 = vrcp.f32 %v1559_v2 }
0x1d43   :  { %v2651_v3 = vpop.eup %2650 }
0x1d44   :  { %v1562_v5 = vmul.f32 %v2651_v3, %v2789_v20 }
0x1d46   :  { %v1563_v11 = vsub.f32 %v1562_v5, %v2793_v28 }
0x1d48   :  { %1566 = vrot.lane.b32.xlu0 %v1563_v11, %s2682_s3  ;;  %v1564_v59 = vmul.f32 %v1563_v11, %v1472_v49 }
0x1dba   :  { %v1567_v7 = vpop.permute.xlu0 %1566 }
0x1dbb   :  { %v1569_v13 = vmul.f32 %v1567_v7, %v1563_v11 }
0x1dbd   :  { %1571 = vrot.lane.b32.xlu1 %v1569_v13, %s2683_s25 }
0x1e2f   :  { %v1572_v14 = vpop.permute.xlu1 %1571 }
0x1e30   :  { %v1574_v16 = vadd.f32 %v1572_v14, %v1564_v59 }
0x1e32   :  { %2652 = vtanh.f32 %v1574_v16 }
0x1e3c   :  { %v2653_v17 = vpop.eup %2652 }
0x1e3d   :  { %1577 = vrot.lane.b32.xlu0 %v2653_v17, %s2682_s3 }
0x1eaf   :  { %v1578_v18 = vpop.permute.xlu0 %1577 }
0x1eb0   :  { %v1580_v21 = vmul.f32 %v1578_v18, %v1563_v11 }
0x1eb2   :  { %1582 = vrot.lane.b32.xlu1 %v1580_v21, %s2683_s25 }
0x1f24   :  { %v1583_v22 = vpop.permute.xlu1 %1582 }
0x1f25   :  { %2416 = vmatmul.mubr.msk.f32.vlgmr.msra.gmra.mrb[24].mxu0 %vm192_vm5, %v1583_v22 }
0x1f26   :  { %2560 = vmatpush3.bf16.msra.mxu0 %v2964_v19  ;;  %2437 = vmatprep.mubr.msk.f32.mxu0 %vm2679_vm1, %v2680_v4 }
0x1f27   :  { %2561 = vmatprep.subr.bf16.mxu0 %v2678_v0 }
0x1f2a   :  { %2563 = vmatpush3.bf16.msra.mxu0 %v2974_v23 }
0x1f2b   :  { %2570 = vmatprep.subr.bf16.mxu0 %v2678_v0 }
0x1ff8   :  { %v1652_v25 = vpop.f32.mrb[24].mxu0 }
0x1ff9   :  { %v1656_v26 = vadd.f32 %v1652_v25, %v1160_v24  ;;  %v2417_v57 = vpop.f32.mrb[25].mxu0  ;;  %v1175_v25 = vadd.f32 %v3036_v29, %v3000_v31 }
0x1ffb   :  { %v1657_v8 = vmul.f32 %v1656_v26, %v2789_v20 }
0x1ffd   :  { %v2123_v27 = vmul.f32 -1.442695, %v1657_v8 }
0x1fff   :  { %2654 = vpow2.f32 %v2123_v27 }
0x2009   :  { %v2655_v12 = vpop.eup %2654 }
0x200a   :  { %v1661_v32 = vadd.f32 1.0, %v2655_v12 }
0x200c   :  { %2656 = vrcp.f32 %v1661_v32 }
0x2016   :  { %v2657_v6 = vpop.eup %2656 }
0x2017   :  { %v1664_v33 = vmul.f32 %v2657_v6, %v2789_v20 }
0x2019   :  { %v1665_v34 = vsub.f32 %v1664_v33, %v2793_v28 }
0x201b   :  { %1668 = vrot.lane.b32.xlu0 %v1665_v34, %s2682_s3  ;;  %v1666_v63 = vmul.f32 %v1665_v34, %v1574_v16 }
0x208d   :  { %v1669_v35 = vpop.permute.xlu0 %1668 }
0x208e   :  { %v1671_v36 = vmul.f32 %v1669_v35, %v1665_v34 }
0x2090   :  { %1673 = vrot.lane.b32.xlu1 %v1671_v36, %s2683_s25 }
0x2102   :  { %v1674_v37 = vpop.permute.xlu1 %1673 }
0x2103   :  { %v1676_v38 = vadd.f32 %v1674_v37, %v1666_v63 }
0x2105   :  { %2658 = vtanh.f32 %v1676_v38 }
0x210f   :  { %v2659_v15 = vpop.eup %2658 }
0x2110   :  { %1679 = vrot.lane.b32.xlu0 %v2659_v15, %s2682_s3 }
0x2182   :  { %v1680_v9 = vpop.permute.xlu0 %1679 }
0x2183   :  { %v1682_v39 = vmul.f32 %v1680_v9, %v1665_v34  ;;  %v1992_v9 = vld [vmem:[%s3154_s7 + $0x18] sm:$0xff] }
0x2185   :  { %1684 = vrot.lane.b32.xlu1 %v1682_v39, %s2683_s25 }
0x21f7   :  { %v1685_v40 = vpop.permute.xlu1 %1684 }
0x21f8   :  { %2427 = vmatmul.mubr.msk.f32.vlgmr.msra.gmra.mrb[16].mxu1 %vm192_vm5, %v1685_v40 }
0x21f9   :  { %2566 = vmatpush3.bf16.msra.mxu1 %v2964_v19  ;;  %2448 = vmatprep.mubr.msk.f32.mxu1 %vm2679_vm1, %v2680_v4 }
0x21fa   :  { %2567 = vmatprep.subr.bf16.mxu1 %v2678_v0 }
0x21fd   :  { %2569 = vmatpush3.bf16.msra.mxu1 %v2974_v23 }
0x22cb   :  { %v1754_v42 = vpop.f32.mrb[16].mxu1 }
0x22cc   :  { %v1758_v43 = vadd.f32 %v1754_v42, %v1165_v41  ;;  %v2428_v44 = vpop.f32.mrb[17].mxu1  ;;  %v14_v41 = vstv %s3155_s8 }
0x22cd   :  { %15 = vst [vmem:[#allocation3] sm:$0x1] %v14_v41 }
0x22ce   :  { %v1759_v45 = vmul.f32 %v1758_v43, %v2789_v20 }
0x22d0   :  { %v2125_v46 = vmul.f32 -1.442695, %v1759_v45 }
0x22d2   :  { %2660 = vpow2.f32 %v2125_v46 }
0x22d4   :  { %v2130_v45 = vld [vmem:[#allocation3] ss:$0 sm:$0xff] }
0x22dc   :  { %v2661_v47 = vpop.eup %2660 }
0x22dd   :  { %v1763_v60 = vadd.f32 1.0, %v2661_v47 }
0x22df   :  { %2662 = vrcp.f32 %v1763_v60 }
0x22e9   :  { %v2663_v19 = vpop.eup %2662 }
0x22ea   :  { %v1766_v48 = vmul.f32 %v2663_v19, %v2789_v20 }
0x22ec   :  { %v1767_v49 = vsub.f32 %v1766_v48, %v2793_v28 }
0x22ee   :  { %1770 = vrot.lane.b32.xlu0 %v1767_v49, %s2682_s3  ;;  %v1768_v61 = vmul.f32 %v1767_v49, %v1676_v38  ;;  %v1989_v38 = vld [vmem:[%s3154_s7] sm:$0xff] }
0x2360   :  { %v1771_v23 = vpop.permute.xlu0 %1770 }
0x2361   :  { %v1773_v50 = vmul.f32 %v1771_v23, %v1767_v49 }
0x2363   :  { %1775 = vrot.lane.b32.xlu1 %v1773_v50, %s2683_s25 }
0x23d5   :  { %v1776_v51 = vpop.permute.xlu1 %1775 }
0x23d6   :  { %v1778_v52 = vadd.f32 %v1776_v51, %v1768_v61 }
0x23d8   :  { %2664 = vtanh.f32 %v1778_v52 }
0x23e2   :  { %v2665_v53 = vpop.eup %2664 }
0x23e3   :  { %1781 = vrot.lane.b32.xlu0 %v2665_v53, %s2682_s3 }
0x2455   :  { %v1782_v54 = vpop.permute.xlu0 %1781 }
0x2456   :  { %v1784_v55 = vmul.f32 %v1782_v54, %v1767_v49 }
0x2458   :  { %1786 = vrot.lane.b32.xlu1 %v1784_v55, %s2683_s25 }
0x24ca   :  { %v1787_v56 = vpop.permute.xlu1 %1786 }
0x24cb   :  { %2438 = vmatmul.mubr.msk.f32.vlgmr.msra.gmra.mrb[26].mxu0 %vm192_vm5, %v1787_v56 }
0x24cc   :  { %2459 = vmatprep.mubr.msk.f32.mxu0 %vm2679_vm1, %v2680_v4 }
0x259e   :  { %v1856_v62 = vpop.f32.mrb[26].mxu0 }
0x259f   :  { %v1860_v10 = vadd.f32 %v1856_v62, %v1170_v58  ;;  %v2439_v1 = vpop.f32.mrb[27].mxu0 }
0x25a1   :  { %v1861_v2 = vmul.f32 %v1860_v10, %v2789_v20 }
0x25a3   :  { %v2127_v3 = vmul.f32 -1.442695, %v1861_v2 }
0x25a5   :  { %2666 = vpow2.f32 %v2127_v3 }
0x25af   :  { %v2667_v5 = vpop.eup %2666 }
0x25b0   :  { %v1865_v11 = vadd.f32 1.0, %v2667_v5 }
0x25b2   :  { %2668 = vrcp.f32 %v1865_v11 }
0x25bc   :  { %v2669_v7 = vpop.eup %2668 }
0x25bd   :  { %v1868_v13 = vmul.f32 %v2669_v7, %v2789_v20 }
0x25bf   :  { %v1869_v59 = vsub.f32 %v1868_v13, %v2793_v28 }
0x25c1   :  { %1872 = vrot.lane.b32.xlu0 %v1869_v59, %s2682_s3  ;;  %v1870_v30 = vmul.f32 %v1869_v59, %v1778_v52 }
0x2633   :  { %v1873_v4 = vpop.permute.xlu0 %1872 }
0x2634   :  { %v1875_v14 = vmul.f32 %v1873_v4, %v1869_v59 }
0x2636   :  { %1877 = vrot.lane.b32.xlu1 %v1875_v14, %s2683_s25 }
0x26a8   :  { %v1878_v16 = vpop.permute.xlu1 %1877 }
0x26a9   :  { %v1880_v17 = vadd.f32 %v1878_v16, %v1870_v30 }
0x26ab   :  { %2670 = vtanh.f32 %v1880_v17 }
0x26b5   :  { %v2671_v18 = vpop.eup %2670 }
0x26b6   :  { %1883 = vrot.lane.b32.xlu0 %v2671_v18, %s2682_s3 }
0x2728   :  { %v1884_v21 = vpop.permute.xlu0 %1883 }
0x2729   :  { %v1886_v22 = vmul.f32 %v1884_v21, %v1869_v59 }
0x272b   :  { %1888 = vrot.lane.b32.xlu1 %v1886_v22, %s2683_s25 }
0x279d   :  { %v1889_v24 = vpop.permute.xlu1 %1888 }
0x279e   :  { %2449 = vmatmul.mubr.msk.f32.vlgmr.msra.gmra.mrb[18].mxu1 %vm192_vm5, %v1889_v24 }
0x2871   :  { %v1958_v26 = vpop.f32.mrb[18].mxu1 }
0x2872   :  { %v1962_v57 = vadd.f32 %v1958_v26, %v1175_v25  ;;  %v2450_v8 = vpop.f32.mrb[19].mxu1 }
0x2874   :  { %v1963_v27 = vmul.f32 %v1962_v57, %v2789_v20 }
0x2876   :  { %v2129_v12 = vmul.f32 -1.442695, %v1963_v27 }
0x2878   :  { %2672 = vpow2.f32 %v2129_v12 }
0x2882   :  { %v2673_v32 = vpop.eup %2672 }
0x2883   :  { %v1967_v6 = vadd.f32 1.0, %v2673_v32 }
0x2885   :  { %2674 = vrcp.f32 %v1967_v6 }
0x288f   :  { %v2675_v33 = vpop.eup %2674 }
0x2890   :  { %v1970_v34 = vmul.f32 %v2675_v33, %v2789_v20  ;;  %v1990_v20 = vld [vmem:[%s3154_s7 + $0x8] sm:$0xff] }
0x2891   :  { %v2571_v15 = vpack.c.bf16 %v1990_v20, %v1989_v38 }
0x2892   :  { %v1971_v35 = vsub.f32 %v1970_v34, %v2793_v28  ;;  %v1991_v28 = vld [vmem:[%s3154_s7 + $0x10] sm:$0xff] }
0x2893   :  { %2572 = vmatpush3.bf16.msra.mxu0 %v2571_v15  ;;  %v2574_v39 = vpack.c.bf16 %v1992_v9, %v1991_v28 }
0x2894   :  { %1974 = vrot.lane.b32.xlu0 %v1971_v35, %s2682_s3  ;;  %v1972_v31 = vmul.f32 %v1971_v35, %v1880_v17  ;;  %2573 = vmatprep.subr.bf16.mxu0 %v2678_v0 }
0x2897   :  { %2575 = vmatpush3.bf16.msra.mxu0 %v2574_v39 }
0x2906   :  { %v1975_v36 = vpop.permute.xlu0 %1974 }
0x2907   :  { %v1977_v63 = vmul.f32 %v1975_v36, %v1971_v35 }
0x2909   :  { %1979 = vrot.lane.b32.xlu1 %v1977_v63, %s2683_s25 }
0x297b   :  { %v1980_v29 = vpop.permute.xlu1 %1979 }
0x297c   :  { %v1982_v37 = vadd.f32 %v1980_v29, %v1972_v31 }
0x297e   :  { %2676 = vtanh.f32 %v1982_v37 }
0x2988   :  { %v2677_v40 = vpop.eup %2676 }
0x2989   :  { %1985 = vrot.lane.b32.xlu0 %v2677_v40, %s2682_s3 }
0x29fb   :  { %v1986_v42 = vpop.permute.xlu0 %1985 }
0x29fc   :  { %v1988_v43 = vmul.f32 %v1986_v42, %v1971_v35 }
0x29fe   :  { %2001 = vrot.lane.b32.xlu1 %v1988_v43, %s2683_s25 }
0x2a70   :  { %v2002_v44 = vpop.permute.xlu1 %2001 }
0x2a71   :  { %2460 = vmatmul.mubr.msk.f32.vlgmr.msra.gmra.mrb[28].mxu0 %vm192_vm5, %v2002_v44 }
0x2b44   :  { %v2071_v46 = vpop.f32.mrb[28].mxu0 }
0x2b45   :  { %v2072_v0 = vadd.f32 %v2130_v45, %v2071_v46  ;;  %v2461_v47 = vpop.f32.mrb[29].mxu0 }
0x2b47   :  { %2076 = vst.msk [vmem:[%s3156_s9] sm:$0xff] %vm2075_vm6, %v2072_v0 }

</bundles_post_ra>
